<compile_context>
chip_gen: v6e
topology: v6e:2x2x1
jax: 0.10.0
libtpu: 0.0.40
codegen_flags: <defaults>
</compile_context>

<pallas_src>
import functools

import jax
import jax.numpy as jnp
from jax.experimental import pallas as pl
from jax.experimental.pallas import tpu as pltpu


def _round_up(n, m):
    return ((n + m - 1) // m) * m


def _make_qnet_kernel(fc1_fma: bool, state_dim: int):
    """Build the fused fc1 -> ReLU -> fc2 kernel body."""
    if fc1_fma:
        def kernel(x_ref, w1_ref, b1_ref, w2_ref, b2_ref, out_ref):
            x = x_ref[...]                      # (TB, S)  f32
            w1 = w1_ref[...]                    # (S, Hp)  f32
            # fc1 on the VPU: S unrolled broadcast-FMAs in f32.  Avoids pushing
            # an 8-lane-wide contraction through the MXU (relayout, <7% fill).
            h = x[:, 0:1] * w1[0:1, :] + b1_ref[...]
            for k in range(1, state_dim):
                h = h + x[:, k:k + 1] * w1[k:k + 1, :]
            h = jnp.maximum(h, 0.0)             # ReLU, f32 epilogue (v5e-safe)
            # fc2 on the MXU: (bf16 or f32) inputs, f32 accumulation,
            # lane-dense padded-to-128 output (unmasked vst).
            o = jnp.dot(h.astype(w2_ref.dtype), w2_ref[...],
                        preferred_element_type=jnp.float32)
            out_ref[...] = (o + b2_ref[...]).astype(out_ref.dtype)
    else:
        def kernel(x_ref, w1_ref, b1_ref, w2_ref, b2_ref, out_ref):
            h = jnp.dot(x_ref[...].astype(w1_ref.dtype), w1_ref[...],
                        preferred_element_type=jnp.float32)
            h = jnp.maximum(h + b1_ref[...], 0.0)
            o = jnp.dot(h.astype(w2_ref.dtype), w2_ref[...],
                        preferred_element_type=jnp.float32)
            out_ref[...] = (o + b2_ref[...]).astype(out_ref.dtype)
    return kernel


def prepare_qnet_params(w1, b1, w2, b2, *, lane=128, fc1_fma_max_k=16,
                        weight_dtype=jnp.bfloat16):
    """One-time (outside the hot loop) parameter prep.

    Hidden/action dims are zero-padded to multiples of 128 lanes so the output
    store is lane-dense; padded rows/cols are zero, so the forward result is
    unchanged and the wrapper slices back to action_dim.  fc2 weights are cast
    to `weight_dtype` (bf16 default; pass jnp.float32 for an exact-f32 matmul
    fallback).  fc1 weights stay f32 when the VPU-FMA path is used.
    """
    state_dim, hidden_dim = w1.shape
    _, action_dim = w2.shape
    Hp = _round_up(hidden_dim, lane)
    Ap = _round_up(action_dim, lane)

    fc1_fma = state_dim <= fc1_fma_max_k
    w1_dtype = jnp.float32 if fc1_fma else weight_dtype

    w1p = jnp.zeros((state_dim, Hp), w1_dtype).at[:, :hidden_dim].set(
        w1.astype(w1_dtype))
    b1p = jnp.zeros((1, Hp), jnp.float32).at[:, :hidden_dim].set(
        b1.reshape(1, -1).astype(jnp.float32))
    w2p = jnp.zeros((Hp, Ap), weight_dtype).at[:hidden_dim, :action_dim].set(
        w2.astype(weight_dtype))
    b2p = jnp.zeros((1, Ap), jnp.float32).at[:, :action_dim].set(
        b2.reshape(1, -1).astype(jnp.float32))

    meta = dict(action_dim=action_dim, fc1_fma=fc1_fma)
    return (w1p, b1p, w2p, b2p), meta


def qnet_forward(x, w1p, b1p, w2p, b2p, *, action_dim, fc1_fma=True,
                 tb_cap=4096, num_tiles=1, min_pallas_rows=16,
                 out_dtype=jnp.float32):
    """x: (B, state_dim) f32.  Params from prepare_qnet_params.
    Returns (B, action_dim) Q-values.  Call under jax.jit so the de-padding
    slice fuses into the consumer."""
    B, S = x.shape
    Hp = w1p.shape[1]
    Ap = w2p.shape[1]

    # Tiny action-selection batches: pallas_call fixed launch/DMA cost dwarfs
    # the math -> let XLA fuse a plain dot chain (same padded params).
    if B < min_pallas_rows:
        h = jnp.maximum(jnp.dot(x, w1p.astype(jnp.float32)) + b1p, 0.0)
        o = jnp.dot(h, w2p.astype(jnp.float32)) + b2p
        return o[:, :action_dim].astype(out_dtype)

    # One grid step by default (whole padded batch per step).  `num_tiles=2`
    # splits the batch into two big "parallel" steps for v7x's 2 TensorCores.
    Bp8 = _round_up(B, 8)
    TB = min(_round_up(pl.cdiv(Bp8, num_tiles), 8), _round_up(tb_cap, 8))
    Bp = _round_up(B, TB)
    if Bp != B:
        x = jnp.pad(x, ((0, Bp - B), (0, 0)))
    grid = (Bp // TB,)

    flops = 2 * Bp * (S * Hp + Hp * Ap)
    bytes_accessed = (Bp * S * x.dtype.itemsize
                      + w1p.size * w1p.dtype.itemsize
                      + w2p.size * w2p.dtype.itemsize
                      + b1p.size * 4 + b2p.size * 4
                      + Bp * Ap * jnp.dtype(out_dtype).itemsize)

    kernel = _make_qnet_kernel(fc1_fma, S)

    out = pl.pallas_call(
        kernel,
        out_shape=jax.ShapeDtypeStruct((Bp, Ap), out_dtype),
        grid=grid,
        in_specs=[
            pl.BlockSpec((TB, S), lambda i: (i, 0)),    # streamed activations
            pl.BlockSpec((S, Hp), lambda i: (0, 0)),    # resident weights
            pl.BlockSpec((1, Hp), lambda i: (0, 0)),    # resident biases
            pl.BlockSpec((Hp, Ap), lambda i: (0, 0)),
            pl.BlockSpec((1, Ap), lambda i: (0, 0)),
        ],
        out_specs=pl.BlockSpec((TB, Ap), lambda i: (i, 0)),  # lane-dense store
        compiler_params=pltpu.CompilerParams(
            dimension_semantics=("parallel",)),
        cost_estimate=pl.CostEstimate(
            flops=flops, transcendentals=0, bytes_accessed=bytes_accessed),
    )(x, w1p, b1p, w2p, b2p)

    # Keep this slice inside the caller's jit so XLA fuses it into the
    # consumer instead of materializing the padded array twice.
    return out[:B, :action_dim]


def init_qnet_params(key, state_dim, hidden_dim, action_dim):
    """Deterministic init mimicking torch.nn.Linear's U(-1/sqrt(fan_in), ...).
    Stored as (in_features, out_features) so the kernel computes x @ W + b."""
    k1, k2, k3, k4 = jax.random.split(key, 4)
    bound1 = 1.0 / jnp.sqrt(jnp.float32(state_dim))
    bound2 = 1.0 / jnp.sqrt(jnp.float32(hidden_dim))
    w1 = jax.random.uniform(k1, (state_dim, hidden_dim), jnp.float32, -bound1, bound1)
    b1 = jax.random.uniform(k2, (1, hidden_dim), jnp.float32, -bound1, bound1)
    w2 = jax.random.uniform(k3, (hidden_dim, action_dim), jnp.float32, -bound2, bound2)
    b2 = jax.random.uniform(k4, (1, action_dim), jnp.float32, -bound2, bound2)
    return w1, b1, w2, b2


if __name__ == "__main__":
    key = jax.random.PRNGKey(0)
    k_x, k_p = jax.random.split(key)

    # DQN-training-style batch; state/hidden/action match the module's
    # natural small sizes.
    batch, state_dim, hidden_dim, action_dim = 256, 8, 32, 4

    x = jax.random.normal(k_x, (batch, state_dim), jnp.float32)
    w1, b1, w2, b2 = init_qnet_params(k_p, state_dim, hidden_dim, action_dim)
    (w1p, b1p, w2p, b2p), meta = prepare_qnet_params(w1, b1, w2, b2)

    # Whole forward (pallas_call + de-padding slice) under one jit.
    fwd = jax.jit(functools.partial(qnet_forward, **meta))

    out = fwd(x, w1p, b1p, w2p, b2p)          # single grid step (TB = 256)
    jax.block_until_ready(out)
    assert out.shape == (batch, action_dim)

    # Reference 1: emulate the kernel's numerics (f32 fc1, bf16-matmul fc2).
    h_ref = jnp.maximum(x @ w1 + b1, 0.0)
    ref_kernel = jnp.dot(h_ref.astype(jnp.bfloat16), w2.astype(jnp.bfloat16),
                         preferred_element_type=jnp.float32) + b2
    assert jnp.allclose(out, ref_kernel, atol=5e-3, rtol=5e-3)

    # Reference 2: full-f32 PyTorch semantics (loose tol for bf16 fc2).
    ref_f32 = jnp.maximum(x @ w1 + b1, 0.0) @ w2 + b2
    assert jnp.allclose(out, ref_f32, atol=2e-2, rtol=2e-2)

    # Tiny action-selection batch: routed to the fused-XLA fallback (the
    # pallas_call fixed cost dwarfs the math at B < 16).
    out_small = fwd(x[:2], w1p, b1p, w2p, b2p)
    jax.block_until_ready(out_small)
    assert out_small.shape == (2, action_dim)
    assert jnp.allclose(out_small, ref_f32[:2], atol=2e-2, rtol=2e-2)

    print("KERNEL_OK")
</pallas_src>

<mosaic_0001>
module attributes {stable_mosaic.version = 11 : i64} {
  func.func @kernel(%arg0: i32, %arg1: memref<256x8xf32, #tpu.memory_space<vmem>>, %arg2: memref<8x128xf32, #tpu.memory_space<vmem>>, %arg3: memref<1x128xf32, #tpu.memory_space<vmem>>, %arg4: memref<128x128xbf16, #tpu.memory_space<vmem>>, %arg5: memref<1x128xf32, #tpu.memory_space<vmem>>, %arg6: memref<256x128xf32, #tpu.memory_space<vmem>>) attributes {dimension_semantics = [#tpu.dimension_semantics<parallel>], iteration_bounds = array<i64: 1>, scalar_prefetch = 0 : i64, scratch_operands = 0 : i64, tpu.core_type = #tpu.core_type<tc>, window_params = [{transform_indices = @transform_0, window_bounds = array<i64: 256, 8>}, {pipeline_mode = #tpu.pipeline_mode<synchronous>, transform_indices = @transform_1, window_bounds = array<i64: 8, 128>}, {pipeline_mode = #tpu.pipeline_mode<synchronous>, transform_indices = @transform_2, window_bounds = array<i64: 1, 128>}, {pipeline_mode = #tpu.pipeline_mode<synchronous>, transform_indices = @transform_3, window_bounds = array<i64: 128, 128>}, {pipeline_mode = #tpu.pipeline_mode<synchronous>, transform_indices = @transform_4, window_bounds = array<i64: 1, 128>}, {transform_indices = @transform_5, window_bounds = array<i64: 256, 128>}]} {
    %c0 = arith.constant 0 : index
    %c0_0 = arith.constant 0 : index
    %0 = vector.load %arg1[%c0, %c0_0] : memref<256x8xf32, #tpu.memory_space<vmem>>, vector<256x8xf32>
    %c0_1 = arith.constant 0 : index
    %c0_2 = arith.constant 0 : index
    %1 = vector.load %arg2[%c0_1, %c0_2] : memref<8x128xf32, #tpu.memory_space<vmem>>, vector<8x128xf32>
    %2 = vector.extract_strided_slice %0 {offsets = [0, 0], sizes = [256, 1], strides = [1, 1]} : vector<256x8xf32> to vector<256x1xf32>
    %3 = vector.extract_strided_slice %1 {offsets = [0, 0], sizes = [1, 128], strides = [1, 1]} : vector<8x128xf32> to vector<1x128xf32>
    %4 = vector.broadcast %2 : vector<256x1xf32> to vector<256x128xf32>
    %5 = vector.broadcast %3 : vector<1x128xf32> to vector<256x128xf32>
    %6 = arith.mulf %4, %5 : vector<256x128xf32>
    %c0_3 = arith.constant 0 : index
    %c0_4 = arith.constant 0 : index
    %7 = vector.load %arg3[%c0_3, %c0_4] : memref<1x128xf32, #tpu.memory_space<vmem>>, vector<1x128xf32>
    %8 = vector.broadcast %7 : vector<1x128xf32> to vector<256x128xf32>
    %9 = arith.addf %6, %8 : vector<256x128xf32>
    %10 = vector.extract_strided_slice %0 {offsets = [0, 1], sizes = [256, 1], strides = [1, 1]} : vector<256x8xf32> to vector<256x1xf32>
    %11 = vector.extract_strided_slice %1 {offsets = [1, 0], sizes = [1, 128], strides = [1, 1]} : vector<8x128xf32> to vector<1x128xf32>
    %12 = vector.broadcast %10 : vector<256x1xf32> to vector<256x128xf32>
    %13 = vector.broadcast %11 : vector<1x128xf32> to vector<256x128xf32>
    %14 = arith.mulf %12, %13 : vector<256x128xf32>
    %15 = arith.addf %9, %14 : vector<256x128xf32>
    %16 = vector.extract_strided_slice %0 {offsets = [0, 2], sizes = [256, 1], strides = [1, 1]} : vector<256x8xf32> to vector<256x1xf32>
    %17 = vector.extract_strided_slice %1 {offsets = [2, 0], sizes = [1, 128], strides = [1, 1]} : vector<8x128xf32> to vector<1x128xf32>
    %18 = vector.broadcast %16 : vector<256x1xf32> to vector<256x128xf32>
    %19 = vector.broadcast %17 : vector<1x128xf32> to vector<256x128xf32>
    %20 = arith.mulf %18, %19 : vector<256x128xf32>
    %21 = arith.addf %15, %20 : vector<256x128xf32>
    %22 = vector.extract_strided_slice %0 {offsets = [0, 3], sizes = [256, 1], strides = [1, 1]} : vector<256x8xf32> to vector<256x1xf32>
    %23 = vector.extract_strided_slice %1 {offsets = [3, 0], sizes = [1, 128], strides = [1, 1]} : vector<8x128xf32> to vector<1x128xf32>
    %24 = vector.broadcast %22 : vector<256x1xf32> to vector<256x128xf32>
    %25 = vector.broadcast %23 : vector<1x128xf32> to vector<256x128xf32>
    %26 = arith.mulf %24, %25 : vector<256x128xf32>
    %27 = arith.addf %21, %26 : vector<256x128xf32>
    %28 = vector.extract_strided_slice %0 {offsets = [0, 4], sizes = [256, 1], strides = [1, 1]} : vector<256x8xf32> to vector<256x1xf32>
    %29 = vector.extract_strided_slice %1 {offsets = [4, 0], sizes = [1, 128], strides = [1, 1]} : vector<8x128xf32> to vector<1x128xf32>
    %30 = vector.broadcast %28 : vector<256x1xf32> to vector<256x128xf32>
    %31 = vector.broadcast %29 : vector<1x128xf32> to vector<256x128xf32>
    %32 = arith.mulf %30, %31 : vector<256x128xf32>
    %33 = arith.addf %27, %32 : vector<256x128xf32>
    %34 = vector.extract_strided_slice %0 {offsets = [0, 5], sizes = [256, 1], strides = [1, 1]} : vector<256x8xf32> to vector<256x1xf32>
    %35 = vector.extract_strided_slice %1 {offsets = [5, 0], sizes = [1, 128], strides = [1, 1]} : vector<8x128xf32> to vector<1x128xf32>
    %36 = vector.broadcast %34 : vector<256x1xf32> to vector<256x128xf32>
    %37 = vector.broadcast %35 : vector<1x128xf32> to vector<256x128xf32>
    %38 = arith.mulf %36, %37 : vector<256x128xf32>
    %39 = arith.addf %33, %38 : vector<256x128xf32>
    %40 = vector.extract_strided_slice %0 {offsets = [0, 6], sizes = [256, 1], strides = [1, 1]} : vector<256x8xf32> to vector<256x1xf32>
    %41 = vector.extract_strided_slice %1 {offsets = [6, 0], sizes = [1, 128], strides = [1, 1]} : vector<8x128xf32> to vector<1x128xf32>
    %42 = vector.broadcast %40 : vector<256x1xf32> to vector<256x128xf32>
    %43 = vector.broadcast %41 : vector<1x128xf32> to vector<256x128xf32>
    %44 = arith.mulf %42, %43 : vector<256x128xf32>
    %45 = arith.addf %39, %44 : vector<256x128xf32>
    %46 = vector.extract_strided_slice %0 {offsets = [0, 7], sizes = [256, 1], strides = [1, 1]} : vector<256x8xf32> to vector<256x1xf32>
    %47 = vector.extract_strided_slice %1 {offsets = [7, 0], sizes = [1, 128], strides = [1, 1]} : vector<8x128xf32> to vector<1x128xf32>
    %48 = vector.broadcast %46 : vector<256x1xf32> to vector<256x128xf32>
    %49 = vector.broadcast %47 : vector<1x128xf32> to vector<256x128xf32>
    %50 = arith.mulf %48, %49 : vector<256x128xf32>
    %51 = arith.addf %45, %50 : vector<256x128xf32>
    %cst = arith.constant 0.000000e+00 : f32
    %52 = vector.broadcast %cst : f32 to vector<256x128xf32>
    %53 = arith.maximumf %51, %52 : vector<256x128xf32>
    %54 = arith.truncf %53 : vector<256x128xf32> to vector<256x128xbf16>
    %c0_5 = arith.constant 0 : index
    %c0_6 = arith.constant 0 : index
    %55 = vector.load %arg4[%c0_5, %c0_6] : memref<128x128xbf16, #tpu.memory_space<vmem>>, vector<128x128xbf16>
    %cst_7 = arith.constant dense<0.000000e+00> : vector<256x128xf32>
    %56 = tpu.matmul %54, %55, %cst_7 {dimension_numbers = #tpu.dot_dimension_numbers<[1], [0], [0], [1], [0, 0, 1, 1], [], []>} : vector<256x128xbf16>, vector<128x128xbf16>, vector<256x128xf32> -> vector<256x128xf32>
    %c0_8 = arith.constant 0 : index
    %c0_9 = arith.constant 0 : index
    %57 = vector.load %arg5[%c0_8, %c0_9] : memref<1x128xf32, #tpu.memory_space<vmem>>, vector<1x128xf32>
    %58 = vector.broadcast %57 : vector<1x128xf32> to vector<256x128xf32>
    %59 = arith.addf %56, %58 : vector<256x128xf32>
    %c0_10 = arith.constant 0 : index
    %c0_11 = arith.constant 0 : index
    %60 = vector.load %arg6[%c0_10, %c0_11] : memref<256x128xf32, #tpu.memory_space<vmem>>, vector<256x128xf32>
    tpu.vector_store %arg6[%c0_10, %c0_11], %59 {strides = array<i32>} : memref<256x128xf32, #tpu.memory_space<vmem>>, vector<256x128xf32>,
    return
  }
  func.func @transform_0(%arg0: i32) -> (i32, i32) {
    %c0_i32 = arith.constant 0 : i32
    %c0_i32_0 = arith.constant 0 : i32
    return %arg0, %c0_i32 : i32, i32
  }
  func.func @transform_1(%arg0: i32) -> (i32, i32) {
    %c0_i32 = arith.constant 0 : i32
    %c0_i32_0 = arith.constant 0 : i32
    %c0_i32_1 = arith.constant 0 : i32
    return %c0_i32, %c0_i32_0 : i32, i32
  }
  func.func @transform_2(%arg0: i32) -> (i32, i32) {
    %c0_i32 = arith.constant 0 : i32
    %c0_i32_0 = arith.constant 0 : i32
    %c0_i32_1 = arith.constant 0 : i32
    return %c0_i32, %c0_i32_0 : i32, i32
  }
  func.func @transform_3(%arg0: i32) -> (i32, i32) {
    %c0_i32 = arith.constant 0 : i32
    %c0_i32_0 = arith.constant 0 : i32
    %c0_i32_1 = arith.constant 0 : i32
    return %c0_i32, %c0_i32_0 : i32, i32
  }
  func.func @transform_4(%arg0: i32) -> (i32, i32) {
    %c0_i32 = arith.constant 0 : i32
    %c0_i32_0 = arith.constant 0 : i32
    %c0_i32_1 = arith.constant 0 : i32
    return %c0_i32, %c0_i32_0 : i32, i32
  }
  func.func @transform_5(%arg0: i32) -> (i32, i32) {
    %c0_i32 = arith.constant 0 : i32
    %c0_i32_0 = arith.constant 0 : i32
    return %arg0, %c0_i32 : i32, i32
  }
}

</mosaic_0001>

<bundles_post_ra>
// kernel: qnet_forward.1
= control target key start
LH: loop header
LB: loop body
LE: loop exit
PB: predicated region body
PF: predicated region fallthrough
CT: control target
= control target key end

     0   :  { %v2146_v0 = vmov 0   ;;  %v2147_v33 = vmov 1   ;;  %v2148_v38 = vmov 2   ;;  %v214_v39 = vlaneseq  ;;  %s3867_s0 = inlined_call_operand.vmem [shape: f32[256,8], index: 0, kind: input, shape index: {}]   ;;  %s3868_s1 = inlined_call_operand.vmem [shape: f32[8,128], index: 1, kind: input, shape index: {}]   ;;  %s3869_s2 = inlined_call_operand.vmem [shape: f32[1,128], index: 2, kind: input, shape index: {}]   ;;  %s3870_s3 = inlined_call_operand.vmem [shape: bf16[128,128], index: 3, kind: input, shape index: {}]   ;;  %s3871_s4 = inlined_call_operand.vmem [shape: f32[1,128], index: 4, kind: input, shape index: {}]   ;;  %s3872_s5 = inlined_call_operand.vmem [shape: f32[256,128], index: 5, kind: output, shape index: {}]  }
   0x1   :  { %2084 = vset.pattern.permute.xlu1 %v2146_v0  ;;  %2083 = vset.pattern.permute.xlu0 %v2146_v0  ;;  %v2187_v1 = vld [vmem:[%s3867_s0 + $0x10] sm:$0xff]  ;;  %v2192_v2 = vld [vmem:[%s3867_s0] sm:$0xff]  ;;  %v2199_v3 = vld [vmem:[%s3867_s0 + $0x18] sm:$0xff] }
   0x2   :  { %66 = vperm.xlu1 %2084, %v2187_v1   ;;  %56 = vperm.xlu0 %2083, %v2192_v2   ;;  %v2204_v4 = vld [vmem:[%s3867_s0 + $0x8] sm:$0xff]  ;;  %v2216_v6 = vld [vmem:[%s3867_s0 + $0x20] sm:$0xff]  ;;  %v2223_v7 = vld [vmem:[%s3867_s0 + $0x38] sm:$0xff]  ;;  %v2422_v42 = vshrl.u32 %v214_v39, 7 }
   0x3   :  { %v2211_v5 = vld [vmem:[%s3867_s0 + $0x28] sm:$0xff]  ;;  %v2228_v8 = vld [vmem:[%s3867_s0 + $0x30] sm:$0xff]  ;;  %v2240_v10 = vld [vmem:[%s3867_s0 + $0x40] sm:$0xff] }
   0x4   :  { %v2235_v9 = vld [vmem:[%s3867_s0 + $0x48] sm:$0xff]  ;;  %v2247_v11 = vld [vmem:[%s3867_s0 + $0x58] sm:$0xff]  ;;  %v2252_v12 = vld [vmem:[%s3867_s0 + $0x50] sm:$0xff]  ;;  %v216_v45 = vsub.s32 0, %v2422_v42 }
   0x5   :  { %v2259_v13 = vld [vmem:[%s3867_s0 + $0x68] sm:$0xff]  ;;  %v2264_v14 = vld [vmem:[%s3867_s0 + $0x60] sm:$0xff]  ;;  %v2271_v15 = vld [vmem:[%s3867_s0 + $0x78] sm:$0xff] }
   0x6   :  { %71 = vperm.xlu1 %2084, %v2199_v3   ;;  %61 = vperm.xlu0 %2083, %v2204_v4   ;;  %v2276_v16 = vld [vmem:[%s3867_s0 + $0x70] sm:$0xff]  ;;  %v2283_v17 = vld [vmem:[%s3867_s0 + $0x88] sm:$0xff]  ;;  %v2288_v18 = vld [vmem:[%s3867_s0 + $0x80] sm:$0xff] }
   0x7   :  { %v2295_v19 = vld [vmem:[%s3867_s0 + $0x98] sm:$0xff]  ;;  %v2300_v20 = vld [vmem:[%s3867_s0 + $0x90] sm:$0xff]  ;;  %v2307_v21 = vld [vmem:[%s3867_s0 + $0xa8] sm:$0xff] }
   0x8   :  { %v2312_v22 = vld [vmem:[%s3867_s0 + $0xa0] sm:$0xff]  ;;  %v2319_v23 = vld [vmem:[%s3867_s0 + $0xb8] sm:$0xff]  ;;  %v2324_v24 = vld [vmem:[%s3867_s0 + $0xb0] sm:$0xff] }
   0x9   :  { %v2331_v25 = vld [vmem:[%s3867_s0 + $0xc8] sm:$0xff]  ;;  %v2336_v26 = vld [vmem:[%s3867_s0 + $0xc0] sm:$0xff]  ;;  %v2343_v27 = vld [vmem:[%s3867_s0 + $0xd8] sm:$0xff] }
   0xa   :  { %81 = vperm.xlu1 %2084, %v2211_v5   ;;  %76 = vperm.xlu0 %2083, %v2216_v6   ;;  %v2348_v28 = vld [vmem:[%s3867_s0 + $0xd0] sm:$0xff]  ;;  %v2355_v29 = vld [vmem:[%s3867_s0 + $0xe8] sm:$0xff]  ;;  %v2360_v30 = vld [vmem:[%s3867_s0 + $0xe0] sm:$0xff] }
   0xb   :  { %v2367_v31 = vld [vmem:[%s3867_s0 + $0xf8] sm:$0xff]  ;;  %v2372_v32 = vld [vmem:[%s3867_s0 + $0xf0] sm:$0xff]  ;;  %v2436_v46 = vld [vmem:[%s3868_s1] sm:$0xff] }
   0xc   :  { %v2443_v49 = vrot.slane %v2436_v46, %v216_v45  ;;  %v2452_v54 = vld [vmem:[%s3869_s2] ss:$0 sm:$0xff] }
   0xe   :  { %91 = vperm.xlu1 %2084, %v2223_v7   ;;  %86 = vperm.xlu0 %2083, %v2228_v8   ;;  %3893 = vst [vmem:[#allocation12_spill] sm:$0xff] %v2443_v49 }
  0x12   :  { %101 = vperm.xlu1 %2084, %v2235_v9   ;;  %96 = vperm.xlu0 %2083, %v2240_v10  }
  0x16   :  { %111 = vperm.xlu1 %2084, %v2247_v11   ;;  %106 = vperm.xlu0 %2083, %v2252_v12  }
  0x1a   :  { %121 = vperm.xlu1 %2084, %v2259_v13   ;;  %116 = vperm.xlu0 %2083, %v2264_v14  }
  0x1e   :  { %131 = vperm.xlu1 %2084, %v2271_v15   ;;  %126 = vperm.xlu0 %2083, %v2276_v16  }
  0x22   :  { %141 = vperm.xlu1 %2084, %v2283_v17   ;;  %136 = vperm.xlu0 %2083, %v2288_v18  }
  0x26   :  { %151 = vperm.xlu1 %2084, %v2295_v19   ;;  %146 = vperm.xlu0 %2083, %v2300_v20  }
  0x2a   :  { %161 = vperm.xlu1 %2084, %v2307_v21   ;;  %156 = vperm.xlu0 %2083, %v2312_v22  }
  0x2e   :  { %171 = vperm.xlu1 %2084, %v2319_v23   ;;  %166 = vperm.xlu0 %2083, %v2324_v24  }
  0x32   :  { %181 = vperm.xlu1 %2084, %v2331_v25   ;;  %176 = vperm.xlu0 %2083, %v2336_v26  }
  0x36   :  { %191 = vperm.xlu1 %2084, %v2343_v27   ;;  %186 = vperm.xlu0 %2083, %v2348_v28  }
  0x3a   :  { %201 = vperm.xlu1 %2084, %v2355_v29   ;;  %196 = vperm.xlu0 %2083, %v2360_v30  }
  0x3e   :  { %211 = vperm.xlu1 %2084, %v2367_v31   ;;  %206 = vperm.xlu0 %2083, %v2372_v32  }
  0x42   :  { %2086 = vset.pattern.permute.xlu1 %v2147_v33  ;;  %2085 = vset.pattern.permute.xlu0 %v2147_v33 }
  0x43   :  { %294 = vperm.xlu1 %2086, %v2204_v4   ;;  %290 = vperm.xlu0 %2085, %v2192_v2  }
  0x47   :  { %298 = vperm.xlu1 %2086, %v2187_v1   ;;  %302 = vperm.xlu0 %2085, %v2199_v3  }
  0x4b   :  { %306 = vperm.xlu1 %2086, %v2216_v6   ;;  %310 = vperm.xlu0 %2085, %v2211_v5  }
  0x4f   :  { %314 = vperm.xlu1 %2086, %v2228_v8   ;;  %318 = vperm.xlu0 %2085, %v2223_v7  }
  0x53   :  { %322 = vperm.xlu1 %2086, %v2240_v10   ;;  %326 = vperm.xlu0 %2085, %v2235_v9  }
  0x57   :  { %330 = vperm.xlu1 %2086, %v2252_v12   ;;  %334 = vperm.xlu0 %2085, %v2247_v11  }
  0x5b   :  { %338 = vperm.xlu1 %2086, %v2264_v14   ;;  %342 = vperm.xlu0 %2085, %v2259_v13  }
  0x5f   :  { %346 = vperm.xlu1 %2086, %v2276_v16   ;;  %350 = vperm.xlu0 %2085, %v2271_v15  }
  0x63   :  { %354 = vperm.xlu1 %2086, %v2288_v18   ;;  %358 = vperm.xlu0 %2085, %v2283_v17  }
  0x67   :  { %362 = vperm.xlu1 %2086, %v2300_v20   ;;  %366 = vperm.xlu0 %2085, %v2295_v19  }
  0x6b   :  { %370 = vperm.xlu1 %2086, %v2312_v22   ;;  %374 = vperm.xlu0 %2085, %v2307_v21  }
  0x6f   :  { %378 = vperm.xlu1 %2086, %v2324_v24   ;;  %382 = vperm.xlu0 %2085, %v2319_v23  }
  0x73   :  { %386 = vperm.xlu1 %2086, %v2336_v26   ;;  %390 = vperm.xlu0 %2085, %v2331_v25  }
  0x77   :  { %394 = vperm.xlu1 %2086, %v2348_v28   ;;  %398 = vperm.xlu0 %2085, %v2343_v27  }
  0x7b   :  { %402 = vperm.xlu1 %2086, %v2360_v30   ;;  %406 = vperm.xlu0 %2085, %v2355_v29  }
  0x7d   :  { %v2406_v34 = vpop.permute.xlu1 %66  ;;  %v2408_v35 = vpop.permute.xlu0 %56 }
  0x7e   :  { %3883 = vst [vmem:[#allocation2_spill] sm:$0xff] %v2406_v34  ;;  %3884 = vst [vmem:[#allocation3_spill] sm:$0xff] %v2408_v35 }
  0x7f   :  { %410 = vperm.xlu1 %2086, %v2372_v32   ;;  %414 = vperm.xlu0 %2085, %v2367_v31  }
  0x81   :  { %v2412_v36 = vpop.permute.xlu1 %71  ;;  %v2414_v37 = vpop.permute.xlu0 %61 }
  0x82   :  { %3885 = vst [vmem:[#allocation4_spill] sm:$0xff] %v2412_v36  ;;  %3886 = vst [vmem:[#allocation5_spill] sm:$0xff] %v2414_v37 }
  0x83   :  { %2087 = vset.pattern.permute.xlu1 %v2148_v38  ;;  %2088 = vset.pattern.permute.xlu0 %v2148_v38 }
  0x84   :  { %486 = vperm.xlu1 %2087, %v2192_v2   ;;  %490 = vperm.xlu0 %2088, %v2204_v4  }
  0x85   :  { %v2418_v40 = vpop.permute.xlu1 %81  ;;  %v2420_v41 = vpop.permute.xlu0 %76 }
  0x86   :  { %3887 = vst [vmem:[#allocation6_spill] sm:$0xff] %v2418_v40  ;;  %3888 = vst [vmem:[#allocation7_spill] sm:$0xff] %v2420_v41  ;;  %v2149_v40 = vmov 3  }
  0x88   :  { %494 = vperm.xlu1 %2087, %v2187_v1   ;;  %502 = vperm.xlu0 %2088, %v2216_v6  }
  0x89   :  { %v2426_v43 = vpop.permute.xlu1 %91  ;;  %v2428_v44 = vpop.permute.xlu0 %86 }
  0x8a   :  { %3889 = vst [vmem:[#allocation8_spill] sm:$0xff] %v2426_v43  ;;  %3890 = vst [vmem:[#allocation9_spill] sm:$0xff] %v2428_v44 }
  0x8c   :  { %498 = vperm.xlu1 %2087, %v2199_v3   ;;  %510 = vperm.xlu0 %2088, %v2228_v8  }
  0x8d   :  { %v2438_v47 = vpop.permute.xlu1 %101  ;;  %v2440_v48 = vpop.permute.xlu0 %96 }
  0x8e   :  { %3891 = vst [vmem:[#allocation10_spill] sm:$0xff] %v2438_v47  ;;  %3892 = vst [vmem:[#allocation11_spill] sm:$0xff] %v2440_v48 }
  0x90   :  { %506 = vperm.xlu1 %2087, %v2211_v5   ;;  %518 = vperm.xlu0 %2088, %v2240_v10  }
  0x91   :  { %v112_v50 = vpop.permute.xlu1 %111  ;;  %v107_v51 = vpop.permute.xlu0 %106 }
  0x92   :  { %v229_v52 = vmul.f32 %v2443_v49, %v112_v50  ;;  %v228_v53 = vmul.f32 %v2443_v49, %v107_v51 }
  0x94   :  { %v2455_v55 = vadd.f32 %v2452_v54, %v229_v52  ;;  %v2458_v56 = vadd.f32 %v2452_v54, %v228_v53  ;;  %514 = vperm.xlu1 %2087, %v2223_v7   ;;  %526 = vperm.xlu0 %2088, %v2252_v12  }
  0x95   :  { %v122_v57 = vpop.permute.xlu1 %121  ;;  %v117_v58 = vpop.permute.xlu0 %116 }
  0x96   :  { %v231_v59 = vmul.f32 %v2443_v49, %v122_v57  ;;  %v230_v60 = vmul.f32 %v2443_v49, %v117_v58 }
  0x98   :  { %v2465_v61 = vadd.f32 %v2452_v54, %v231_v59  ;;  %v2468_v62 = vadd.f32 %v2452_v54, %v230_v60  ;;  %522 = vperm.xlu1 %2087, %v2235_v9   ;;  %534 = vperm.xlu0 %2088, %v2264_v14  }
  0x99   :  { %v132_v63 = vpop.permute.xlu1 %131  ;;  %v127_v0 = vpop.permute.xlu0 %126 }
  0x9a   :  { %v233_v33 = vmul.f32 %v2443_v49, %v132_v63  ;;  %v232_v38 = vmul.f32 %v2443_v49, %v127_v0 }
  0x9c   :  { %v2475_v39 = vadd.f32 %v2452_v54, %v233_v33  ;;  %v2478_v45 = vadd.f32 %v2452_v54, %v232_v38  ;;  %530 = vperm.xlu1 %2087, %v2247_v11   ;;  %542 = vperm.xlu0 %2088, %v2276_v16  }
  0x9d   :  { %v2482_v50 = vpop.permute.xlu1 %141  ;;  %v2484_v51 = vpop.permute.xlu0 %136 }
  0x9e   :  { %3894 = vst [vmem:[#allocation13_spill] sm:$0xff] %v2482_v50  ;;  %3895 = vst [vmem:[#allocation14_spill] sm:$0xff] %v2484_v51 }
  0xa0   :  { %538 = vperm.xlu1 %2087, %v2259_v13   ;;  %550 = vperm.xlu0 %2088, %v2288_v18  }
  0xa1   :  { %v2488_v52 = vpop.permute.xlu1 %151  ;;  %v2490_v53 = vpop.permute.xlu0 %146 }
  0xa2   :  { %3896 = vst [vmem:[#allocation15_spill] sm:$0xff] %v2488_v52 }
  0xa4   :  { %546 = vperm.xlu1 %2087, %v2271_v15   ;;  %558 = vperm.xlu0 %2088, %v2300_v20  }
  0xa5   :  { %v2494_v57 = vpop.permute.xlu1 %161  ;;  %v2496_v58 = vpop.permute.xlu0 %156 }
  0xa6   :  { %3897 = vst [vmem:[#allocation16_spill] sm:$0xff] %v2494_v57 }
  0xa8   :  { %554 = vperm.xlu1 %2087, %v2283_v17   ;;  %566 = vperm.xlu0 %2088, %v2312_v22  }
  0xa9   :  { %v2500_v59 = vpop.permute.xlu1 %171  ;;  %v2502_v60 = vpop.permute.xlu0 %166 }
  0xaa   :  { %3898 = vst [vmem:[#allocation17_spill] sm:$0xff] %v2500_v59  ;;  %3899 = vst [vmem:[#allocation18_spill] sm:$0xff] %v2502_v60 }
  0xac   :  { %562 = vperm.xlu1 %2087, %v2295_v19   ;;  %574 = vperm.xlu0 %2088, %v2324_v24  }
  0xad   :  { %v182_v63 = vpop.permute.xlu1 %181  ;;  %v177_v0 = vpop.permute.xlu0 %176 }
  0xae   :  { %v243_v33 = vmul.f32 %v2443_v49, %v182_v63  ;;  %v242_v38 = vmul.f32 %v2443_v49, %v177_v0 }
  0xb0   :  { %v2509_v48 = vadd.f32 %v2452_v54, %v243_v33  ;;  %v2512_v57 = vadd.f32 %v2452_v54, %v242_v38  ;;  %570 = vperm.xlu1 %2087, %v2307_v21   ;;  %582 = vperm.xlu0 %2088, %v2336_v26  }
  0xb1   :  { %v192_v60 = vpop.permute.xlu1 %191  ;;  %v187_v59 = vpop.permute.xlu0 %186 }
  0xb2   :  { %v245_v52 = vmul.f32 %v2443_v49, %v192_v60  ;;  %v244_v51 = vmul.f32 %v2443_v49, %v187_v59 }
  0xb4   :  { %v2519_v63 = vadd.f32 %v2452_v54, %v245_v52  ;;  %v2522_v0 = vadd.f32 %v2452_v54, %v244_v51  ;;  %578 = vperm.xlu1 %2087, %v2319_v23   ;;  %590 = vperm.xlu0 %2088, %v2348_v28  }
  0xb5   :  { %v202_v33 = vpop.permute.xlu1 %201  ;;  %v197_v38 = vpop.permute.xlu0 %196 }
  0xb6   :  { %v247_v50 = vmul.f32 %v2443_v49, %v202_v33  ;;  %v246_v44 = vmul.f32 %v2443_v49, %v197_v38 }
  0xb8   :  { %v2529_v60 = vadd.f32 %v2452_v54, %v247_v50  ;;  %v2532_v59 = vadd.f32 %v2452_v54, %v246_v44  ;;  %586 = vperm.xlu1 %2087, %v2331_v25   ;;  %598 = vperm.xlu0 %2088, %v2360_v30  }
  0xb9   :  { %v212_v51 = vpop.permute.xlu1 %211  ;;  %v207_v52 = vpop.permute.xlu0 %206 }
  0xba   :  { %v249_v43 = vmul.f32 %v2443_v49, %v212_v51  ;;  %v248_v41 = vmul.f32 %v2443_v49, %v207_v52 }
  0xbc   :  { %v2539_v33 = vadd.f32 %v2452_v54, %v249_v43  ;;  %v2542_v38 = vadd.f32 %v2452_v54, %v248_v41  ;;  %594 = vperm.xlu1 %2087, %v2343_v27   ;;  %606 = vperm.xlu0 %2088, %v2372_v32  }
  0xbe   :  { %v2546_v44 = vpop.permute.xlu1 %294  ;;  %v2548_v50 = vpop.permute.xlu0 %290 }
  0xbf   :  { %3900 = vst [vmem:[#allocation19_spill] sm:$0xff] %v2546_v44  ;;  %3901 = vst [vmem:[#allocation20_spill] sm:$0xff] %v2548_v50 }
  0xc0   :  { %602 = vperm.xlu1 %2087, %v2355_v29   ;;  %2089 = vset.pattern.permute.xlu0 %v2149_v40 }
  0xc1   :  { %682 = vperm.xlu0 %2089, %v2192_v2  }
  0xc2   :  { %v2552_v51 = vpop.permute.xlu1 %298  ;;  %v2554_v43 = vpop.permute.xlu0 %302 }
  0xc3   :  { %3902 = vst [vmem:[#allocation21_spill] sm:$0xff] %v2552_v51  ;;  %3903 = vst [vmem:[#allocation22_spill] sm:$0xff] %v2554_v43  ;;  %v419_v51 = vsub.s32 1, %v2422_v42 }
  0xc4   :  { %610 = vperm.xlu1 %2087, %v2367_v31  }
  0xc5   :  { %694 = vperm.xlu0 %2089, %v2199_v3  }
  0xc6   :  { %v2558_v41 = vpop.permute.xlu1 %306  ;;  %v2560_v54 = vpop.permute.xlu0 %310 }
  0xc7   :  { %3904 = vst [vmem:[#allocation23_spill] sm:$0xff] %v2558_v41  ;;  %3905 = vst [vmem:[#allocation24_spill] sm:$0xff] %v2560_v54 }
  0xc8   :  { %2090 = vset.pattern.permute.xlu1 %v2149_v40  ;;  %v2576_v40 = vrot.slane %v2436_v46, %v419_v51 }
  0xc9   :  { %686 = vperm.xlu1 %2090, %v2204_v4   ;;  %702 = vperm.xlu0 %2089, %v2211_v5  }
  0xca   :  { %v2564_v52 = vpop.permute.xlu1 %314  ;;  %v2566_v50 = vpop.permute.xlu0 %318 }
  0xcb   :  { %3906 = vst [vmem:[#allocation25_spill] sm:$0xff] %v2564_v52  ;;  %3907 = vst [vmem:[#allocation26_spill] sm:$0xff] %v2566_v50 }
  0xcd   :  { %690 = vperm.xlu1 %2090, %v2187_v1   ;;  %710 = vperm.xlu0 %2089, %v2223_v7  }
  0xce   :  { %v2571_v43 = vpop.permute.xlu1 %322  ;;  %v2573_v41 = vpop.permute.xlu0 %326 }
  0xcf   :  { %3908 = vst [vmem:[#allocation27_spill] sm:$0xff] %v2571_v43  ;;  %3909 = vst [vmem:[#allocation28_spill] sm:$0xff] %v2573_v41 }
  0xd1   :  { %698 = vperm.xlu1 %2090, %v2216_v6   ;;  %718 = vperm.xlu0 %2089, %v2235_v9  }
  0xd2   :  { %v331_v52 = vpop.permute.xlu1 %330  ;;  %v335_v54 = vpop.permute.xlu0 %334 }
  0xd3   :  { %v431_v50 = vmul.f32 %v2576_v40, %v331_v52  ;;  %v432_v44 = vmul.f32 %v2576_v40, %v335_v54 }
  0xd5   :  { %v2583_v47 = vadd.f32 %v431_v50, %v2458_v56  ;;  %v2586_v43 = vadd.f32 %v432_v44, %v2455_v55  ;;  %706 = vperm.xlu1 %2090, %v2228_v8   ;;  %726 = vperm.xlu0 %2089, %v2247_v11  }
  0xd6   :  { %v339_v51 = vpop.permute.xlu1 %338  ;;  %v343_v41 = vpop.permute.xlu0 %342 }
  0xd7   :  { %v433_v37 = vmul.f32 %v2576_v40, %v339_v51  ;;  %v434_v36 = vmul.f32 %v2576_v40, %v343_v41 }
  0xd9   :  { %v2593_v52 = vadd.f32 %v433_v37, %v2468_v62  ;;  %v2596_v54 = vadd.f32 %v434_v36, %v2465_v61  ;;  %714 = vperm.xlu1 %2090, %v2240_v10   ;;  %734 = vperm.xlu0 %2089, %v2259_v13  }
  0xda   :  { %v347_v55 = vpop.permute.xlu1 %346  ;;  %v351_v56 = vpop.permute.xlu0 %350 }
  0xdb   :  { %v435_v44 = vmul.f32 %v2576_v40, %v347_v55  ;;  %v436_v50 = vmul.f32 %v2576_v40, %v351_v56 }
  0xdd   :  { %v2603_v51 = vadd.f32 %v435_v44, %v2478_v45  ;;  %v2606_v41 = vadd.f32 %v436_v50, %v2475_v39  ;;  %722 = vperm.xlu1 %2090, %v2252_v12   ;;  %742 = vperm.xlu0 %2089, %v2271_v15  }
  0xde   :  { %v2610_v36 = vpop.permute.xlu1 %354  ;;  %v2612_v37 = vpop.permute.xlu0 %358 }
  0xdf   :  { %3910 = vst [vmem:[#allocation29_spill] sm:$0xff] %v2610_v36  ;;  %3911 = vst [vmem:[#allocation30_spill] sm:$0xff] %v2612_v37 }
  0xe1   :  { %730 = vperm.xlu1 %2090, %v2264_v14   ;;  %750 = vperm.xlu0 %2089, %v2283_v17  }
  0xe2   :  { %v2616_v61 = vpop.permute.xlu1 %362  ;;  %v2618_v62 = vpop.permute.xlu0 %366 }
  0xe3   :  { %3912 = vst [vmem:[#allocation31_spill] sm:$0xff] %v2618_v62 }
  0xe5   :  { %738 = vperm.xlu1 %2090, %v2276_v16   ;;  %758 = vperm.xlu0 %2089, %v2295_v19  }
  0xe6   :  { %v2622_v39 = vpop.permute.xlu1 %370  ;;  %v2624_v45 = vpop.permute.xlu0 %374 }
  0xe7   :  { %3913 = vst [vmem:[#allocation32_spill] sm:$0xff] %v2622_v39  ;;  %3914 = vst [vmem:[#allocation33_spill] sm:$0xff] %v2624_v45 }
  0xe9   :  { %746 = vperm.xlu1 %2090, %v2288_v18   ;;  %766 = vperm.xlu0 %2089, %v2307_v21  }
  0xea   :  { %v2628_v55 = vpop.permute.xlu1 %378  ;;  %v2630_v56 = vpop.permute.xlu0 %382 }
  0xeb   :  { %3915 = vst [vmem:[#allocation34_spill] sm:$0xff] %v2628_v55  ;;  %3916 = vst [vmem:[#allocation35_spill] sm:$0xff] %v2630_v56 }
  0xed   :  { %754 = vperm.xlu1 %2090, %v2300_v20   ;;  %774 = vperm.xlu0 %2089, %v2319_v23  }
  0xee   :  { %v387_v44 = vpop.permute.xlu1 %386  ;;  %v391_v50 = vpop.permute.xlu0 %390 }
  0xef   :  { %v445_v62 = vmul.f32 %v2576_v40, %v387_v44  ;;  %v446_v37 = vmul.f32 %v2576_v40, %v391_v50 }
  0xf1   :  { %v2637_v45 = vadd.f32 %v445_v62, %v2512_v57  ;;  %v2640_v36 = vadd.f32 %v446_v37, %v2509_v48  ;;  %762 = vperm.xlu1 %2090, %v2312_v22   ;;  %782 = vperm.xlu0 %2089, %v2331_v25  }
  0xf2   :  { %v395_v56 = vpop.permute.xlu1 %394  ;;  %v399_v55 = vpop.permute.xlu0 %398 }
  0xf3   :  { %v447_v35 = vmul.f32 %v2576_v40, %v395_v56  ;;  %v448_v34 = vmul.f32 %v2576_v40, %v399_v55 }
  0xf5   :  { %v2647_v44 = vadd.f32 %v447_v35, %v2522_v0  ;;  %v2650_v50 = vadd.f32 %v448_v34, %v2519_v63  ;;  %770 = vperm.xlu1 %2090, %v2324_v24   ;;  %790 = vperm.xlu0 %2089, %v2343_v27  }
  0xf6   :  { %v403_v48 = vpop.permute.xlu1 %402  ;;  %v407_v57 = vpop.permute.xlu0 %406 }
  0xf7   :  { %v449_v37 = vmul.f32 %v2576_v40, %v403_v48  ;;  %v450_v62 = vmul.f32 %v2576_v40, %v407_v57 }
  0xf9   :  { %v2657_v56 = vadd.f32 %v449_v37, %v2532_v59  ;;  %v2660_v55 = vadd.f32 %v450_v62, %v2529_v60  ;;  %778 = vperm.xlu1 %2090, %v2336_v26   ;;  %798 = vperm.xlu0 %2089, %v2355_v29   ;;  %v2150_v37 = vmov 4  }
  0xfa   :  { %v411_v34 = vpop.permute.xlu1 %410  ;;  %v415_v35 = vpop.permute.xlu0 %414 }
  0xfb   :  { %v451_v63 = vmul.f32 %v2576_v40, %v411_v34  ;;  %v452_v0 = vmul.f32 %v2576_v40, %v415_v35  ;;  %v615_v35 = vsub.s32 2, %v2422_v42 }
  0xfd   :  { %v2667_v48 = vadd.f32 %v451_v63, %v2542_v38  ;;  %v2670_v57 = vadd.f32 %v452_v0, %v2539_v33  ;;  %786 = vperm.xlu1 %2090, %v2348_v28   ;;  %806 = vperm.xlu0 %2089, %v2367_v31  }
  0xff   :  { %v2674_v60 = vpop.permute.xlu1 %486  ;;  %v2676_v59 = vpop.permute.xlu0 %490 }
 0x100   :  { %3917 = vst [vmem:[#allocation36_spill] sm:$0xff] %v2674_v60  ;;  %3918 = vst [vmem:[#allocation37_spill] sm:$0xff] %v2676_v59 }
 0x101   :  { %794 = vperm.xlu1 %2090, %v2360_v30   ;;  %2092 = vset.pattern.permute.xlu0 %v2150_v37 }
 0x102   :  { %882 = vperm.xlu0 %2092, %v2204_v4  }
 0x103   :  { %v2680_v62 = vpop.permute.xlu1 %494  ;;  %v2682_v38 = vpop.permute.xlu0 %502 }
 0x104   :  { %3919 = vst [vmem:[#allocation38_spill] sm:$0xff] %v2680_v62  ;;  %3920 = vst [vmem:[#allocation39_spill] sm:$0xff] %v2682_v38  ;;  %v2698_v38 = vrot.slane %v2436_v46, %v615_v35 }
 0x105   :  { %802 = vperm.xlu1 %2090, %v2372_v32  }
 0x106   :  { %894 = vperm.xlu0 %2092, %v2216_v6  }
 0x107   :  { %v2686_v33 = vpop.permute.xlu1 %498  ;;  %v2688_v34 = vpop.permute.xlu0 %510 }
 0x108   :  { %3921 = vst [vmem:[#allocation40_spill] sm:$0xff] %v2686_v33  ;;  %3922 = vst [vmem:[#allocation41_spill] sm:$0xff] %v2688_v34 }
 0x109   :  { %2091 = vset.pattern.permute.xlu1 %v2150_v37 }
 0x10a   :  { %878 = vperm.xlu1 %2091, %v2192_v2   ;;  %902 = vperm.xlu0 %2092, %v2228_v8  }
 0x10b   :  { %v2693_v63 = vpop.permute.xlu1 %506  ;;  %v2695_v0 = vpop.permute.xlu0 %518 }
 0x10c   :  { %3923 = vst [vmem:[#allocation42_spill] sm:$0xff] %v2693_v63  ;;  %3924 = vst [vmem:[#allocation43_spill] sm:$0xff] %v2695_v0 }
 0x10e   :  { %886 = vperm.xlu1 %2091, %v2187_v1   ;;  %910 = vperm.xlu0 %2092, %v2240_v10  }
 0x10f   :  { %v2702_v33 = vpop.permute.xlu1 %514  ;;  %v527_v37 = vpop.permute.xlu0 %526 }
 0x110   :  { %3925 = vst [vmem:[#allocation44_spill] sm:$0xff] %v2702_v33  ;;  %v627_v34 = vmul.f32 %v2698_v38, %v527_v37 }
 0x112   :  { %v2706_v62 = vadd.f32 %v627_v34, %v2583_v47  ;;  %890 = vperm.xlu1 %2091, %v2199_v3   ;;  %918 = vperm.xlu0 %2092, %v2252_v12  }
 0x113   :  { %v2710_v0 = vpop.permute.xlu1 %522  ;;  %v535_v35 = vpop.permute.xlu0 %534 }
 0x114   :  { %3926 = vst [vmem:[#allocation45_spill] sm:$0xff] %v2710_v0  ;;  %v629_v63 = vmul.f32 %v2698_v38, %v535_v35 }
 0x116   :  { %v2714_v59 = vadd.f32 %v629_v63, %v2593_v52  ;;  %898 = vperm.xlu1 %2091, %v2211_v5   ;;  %926 = vperm.xlu0 %2092, %v2264_v14  }
 0x117   :  { %v531_v37 = vpop.permute.xlu1 %530  ;;  %v543_v33 = vpop.permute.xlu0 %542 }
 0x118   :  { %v628_v47 = vmul.f32 %v2698_v38, %v531_v37  ;;  %v631_v34 = vmul.f32 %v2698_v38, %v543_v33 }
 0x11a   :  { %v2721_v60 = vadd.f32 %v628_v47, %v2586_v43  ;;  %v2724_v0 = vadd.f32 %v631_v34, %v2603_v51  ;;  %906 = vperm.xlu1 %2091, %v2223_v7   ;;  %934 = vperm.xlu0 %2092, %v2276_v16  }
 0x11b   :  { %v539_v52 = vpop.permute.xlu1 %538  ;;  %v2728_v63 = vpop.permute.xlu0 %550 }
 0x11c   :  { %3927 = vst [vmem:[#allocation46_spill] sm:$0xff] %v2728_v63  ;;  %v630_v35 = vmul.f32 %v2698_v38, %v539_v52 }
 0x11e   :  { %v2732_v39 = vadd.f32 %v630_v35, %v2596_v54  ;;  %914 = vperm.xlu1 %2091, %v2235_v9   ;;  %942 = vperm.xlu0 %2092, %v2288_v18  }
 0x11f   :  { %v547_v43 = vpop.permute.xlu1 %546  ;;  %v2736_v33 = vpop.permute.xlu0 %558 }
 0x120   :  { %3928 = vst [vmem:[#allocation47_spill] sm:$0xff] %v2736_v33  ;;  %v632_v51 = vmul.f32 %v2698_v38, %v547_v43 }
 0x122   :  { %v2740_v37 = vadd.f32 %v632_v51, %v2606_v41  ;;  %922 = vperm.xlu1 %2091, %v2247_v11   ;;  %950 = vperm.xlu0 %2092, %v2300_v20  }
 0x123   :  { %v2744_v47 = vpop.permute.xlu1 %554  ;;  %v2746_v54 = vpop.permute.xlu0 %566 }
 0x124   :  { %3929 = vst [vmem:[#allocation48_spill] sm:$0xff] %v2744_v47  ;;  %3930 = vst [vmem:[#allocation49_spill] sm:$0xff] %v2746_v54 }
 0x126   :  { %930 = vperm.xlu1 %2091, %v2259_v13   ;;  %958 = vperm.xlu0 %2092, %v2312_v22  }
 0x127   :  { %v2750_v34 = vpop.permute.xlu1 %562  ;;  %v2752_v52 = vpop.permute.xlu0 %574 }
 0x128   :  { %3931 = vst [vmem:[#allocation50_spill] sm:$0xff] %v2750_v34  ;;  %3932 = vst [vmem:[#allocation51_spill] sm:$0xff] %v2752_v52 }
 0x12a   :  { %938 = vperm.xlu1 %2091, %v2271_v15   ;;  %966 = vperm.xlu0 %2092, %v2324_v24  }
 0x12b   :  { %v2756_v41 = vpop.permute.xlu1 %570  ;;  %v583_v35 = vpop.permute.xlu0 %582 }
 0x12c   :  { %3933 = vst [vmem:[#allocation52_spill] sm:$0xff] %v2756_v41  ;;  %v641_v43 = vmul.f32 %v2698_v38, %v583_v35 }
 0x12e   :  { %v2760_v51 = vadd.f32 %v641_v43, %v2637_v45  ;;  %946 = vperm.xlu1 %2091, %v2283_v17   ;;  %974 = vperm.xlu0 %2092, %v2336_v26  }
 0x12f   :  { %v2764_v47 = vpop.permute.xlu1 %578  ;;  %v591_v34 = vpop.permute.xlu0 %590 }
 0x130   :  { %3934 = vst [vmem:[#allocation53_spill] sm:$0xff] %v2764_v47  ;;  %v643_v52 = vmul.f32 %v2698_v38, %v591_v34 }
 0x132   :  { %v2768_v63 = vadd.f32 %v643_v52, %v2647_v44  ;;  %954 = vperm.xlu1 %2091, %v2295_v19   ;;  %982 = vperm.xlu0 %2092, %v2348_v28  }
 0x133   :  { %v587_v35 = vpop.permute.xlu1 %586  ;;  %v599_v41 = vpop.permute.xlu0 %598 }
 0x134   :  { %v642_v45 = vmul.f32 %v2698_v38, %v587_v35  ;;  %v645_v43 = vmul.f32 %v2698_v38, %v599_v41 }
 0x136   :  { %v2775_v54 = vadd.f32 %v642_v45, %v2640_v36  ;;  %v2778_v47 = vadd.f32 %v645_v43, %v2657_v56  ;;  %962 = vperm.xlu1 %2091, %v2307_v21   ;;  %990 = vperm.xlu0 %2092, %v2360_v30   ;;  %v3873_v43 = vmov 5  }
 0x137   :  { %v595_v44 = vpop.permute.xlu1 %594  ;;  %v607_v34 = vpop.permute.xlu0 %606 }
 0x138   :  { %3935 = vst [vmem:[#allocation54_spill] sm:$0xff] %v2775_v54  ;;  %v644_v52 = vmul.f32 %v2698_v38, %v595_v44  ;;  %v647_v33 = vmul.f32 %v2698_v38, %v607_v34 }
 0x13a   :  { %v2785_v35 = vadd.f32 %v644_v52, %v2650_v50  ;;  %v2788_v41 = vadd.f32 %v647_v33, %v2667_v48  ;;  %970 = vperm.xlu1 %2091, %v2319_v23   ;;  %998 = vperm.xlu0 %2092, %v2372_v32  }
 0x13b   :  { %v603_v36 = vpop.permute.xlu1 %602 }
 0x13c   :  { %v646_v56 = vmul.f32 %v2698_v38, %v603_v36  ;;  %v2793_v30 = vpop.permute.xlu0 %682 }
 0x13e   :  { %v2796_v45 = vadd.f32 %v646_v56, %v2660_v55  ;;  %978 = vperm.xlu1 %2091, %v2331_v25   ;;  %2093 = vset.pattern.permute.xlu0 %v3873_v43 }
 0x13f   :  { %v611_v50 = vpop.permute.xlu1 %610  ;;  %1074 = vperm.xlu0 %2093, %v2192_v2  }
 0x140   :  { %v648_v48 = vmul.f32 %v2698_v38, %v611_v50  ;;  %v2802_v33 = vpop.permute.xlu0 %694 }
 0x142   :  { %v2805_v32 = vadd.f32 %v648_v48, %v2670_v57  ;;  %986 = vperm.xlu1 %2091, %v2343_v27  }
 0x143   :  { %1086 = vperm.xlu0 %2093, %v2199_v3  }
 0x144   :  { %3936 = vst [vmem:[#allocation55_spill] sm:$0xff] %v2805_v32  ;;  %v2809_v55 = vpop.permute.xlu1 %686  ;;  %v2811_v25 = vpop.permute.xlu0 %702 }
 0x146   :  { %994 = vperm.xlu1 %2091, %v2355_v29  }
 0x147   :  { %1094 = vperm.xlu0 %2093, %v2211_v5  }
 0x148   :  { %v2815_v44 = vpop.permute.xlu1 %690  ;;  %v2817_v34 = vpop.permute.xlu0 %710 }
 0x149   :  { %3937 = vst [vmem:[#allocation56_spill] sm:$0xff] %v2817_v34  ;;  %v3005_v34 = vld [vmem:[%s3867_s0 + $0x28] sm:$0xff] }
 0x14a   :  { %1002 = vperm.xlu1 %2091, %v2367_v31  }
 0x14b   :  { %1102 = vperm.xlu0 %2093, %v2223_v7  }
 0x14c   :  { %v2821_v57 = vpop.permute.xlu1 %698  ;;  %v2823_v52 = vpop.permute.xlu0 %718 }
 0x14d   :  { %3938 = vst [vmem:[#allocation57_spill] sm:$0xff] %v2821_v57  ;;  %v3877_v57 = vmov 7  }
 0x14e   :  { %2094 = vset.pattern.permute.xlu1 %v3873_v43 }
 0x14f   :  { %1078 = vperm.xlu1 %2094, %v2204_v4   ;;  %1110 = vperm.xlu0 %2093, %v2235_v9  }
 0x150   :  { %v2828_v36 = vpop.permute.xlu1 %706  ;;  %v2830_v5 = vpop.permute.xlu0 %726 }
 0x151   :  { %3939 = vst [vmem:[#allocation58_spill] sm:$0xff] %v2828_v36 }
 0x153   :  { %1082 = vperm.xlu1 %2094, %v2187_v1   ;;  %1118 = vperm.xlu0 %2093, %v2247_v11  }
 0x154   :  { %v2834_v56 = vpop.permute.xlu1 %714  ;;  %v2836_v50 = vpop.permute.xlu0 %734 }
 0x155   :  { %3940 = vst [vmem:[#allocation59_spill] sm:$0xff] %v2834_v56 }
 0x157   :  { %1090 = vperm.xlu1 %2094, %v2216_v6   ;;  %1126 = vperm.xlu0 %2093, %v2259_v13  }
 0x158   :  { %v2840_v48 = vpop.permute.xlu1 %722  ;;  %v2842_v43 = vpop.permute.xlu0 %742 }
 0x15b   :  { %1098 = vperm.xlu1 %2094, %v2228_v8   ;;  %1134 = vperm.xlu0 %2093, %v2271_v15  }
 0x15c   :  { %v2846_v32 = vpop.permute.xlu1 %730  ;;  %v2848_v54 = vpop.permute.xlu0 %750 }
 0x15d   :  { %3941 = vst [vmem:[#allocation60_spill] sm:$0xff] %v2848_v54 }
 0x15f   :  { %1106 = vperm.xlu1 %2094, %v2240_v10   ;;  %1142 = vperm.xlu0 %2093, %v2283_v17  }
 0x160   :  { %v2852_v11 = vpop.permute.xlu1 %738  ;;  %v2854_v6 = vpop.permute.xlu0 %758 }
 0x161   :  { %3942 = vst [vmem:[#allocation61_spill] sm:$0xff] %v2854_v6 }
 0x163   :  { %1114 = vperm.xlu1 %2094, %v2252_v12   ;;  %1150 = vperm.xlu0 %2093, %v2295_v19  }
 0x164   :  { %v2858_v13 = vpop.permute.xlu1 %746  ;;  %v2860_v8 = vpop.permute.xlu0 %766 }
 0x165   :  { %3943 = vst [vmem:[#allocation62_spill] sm:$0xff] %v2858_v13  ;;  %3944 = vst [vmem:[#allocation63_spill] sm:$0xff] %v2860_v8 }
 0x167   :  { %1122 = vperm.xlu1 %2094, %v2264_v14   ;;  %1158 = vperm.xlu0 %2093, %v2307_v21  }
 0x168   :  { %v2864_v15 = vpop.permute.xlu1 %754  ;;  %v2866_v10 = vpop.permute.xlu0 %774 }
 0x169   :  { %3945 = vst [vmem:[#allocation64_spill] sm:$0xff] %v2866_v10 }
 0x16b   :  { %1130 = vperm.xlu1 %2094, %v2276_v16   ;;  %1166 = vperm.xlu0 %2093, %v2319_v23  }
 0x16c   :  { %v2870_v56 = vpop.permute.xlu1 %762  ;;  %v2872_v6 = vpop.permute.xlu0 %782 }
 0x16d   :  { %3946 = vst [vmem:[#allocation65_spill] sm:$0xff] %v2872_v6 }
 0x16f   :  { %1138 = vperm.xlu1 %2094, %v2288_v18   ;;  %1170 = vperm.xlu0 %2093, %v2336_v26   ;;  %v3875_v26 = vmov 6  }
 0x170   :  { %v2876_v8 = vpop.permute.xlu1 %770  ;;  %v2878_v13 = vpop.permute.xlu0 %790 }
 0x171   :  { %3947 = vst [vmem:[#allocation66_spill] sm:$0xff] %v2876_v8 }
 0x173   :  { %1146 = vperm.xlu1 %2094, %v2300_v20   ;;  %1182 = vperm.xlu0 %2093, %v2343_v27  }
 0x174   :  { %v2882_v21 = vpop.permute.xlu1 %778  ;;  %v2884_v16 = vpop.permute.xlu0 %798 }
 0x177   :  { %1154 = vperm.xlu1 %2094, %v2312_v22   ;;  %1190 = vperm.xlu0 %2093, %v2355_v29  }
 0x178   :  { %v2888_v6 = vpop.permute.xlu1 %786  ;;  %v2890_v10 = vpop.permute.xlu0 %806 }
 0x179   :  { %3948 = vst [vmem:[#allocation67_spill] sm:$0xff] %v2890_v10 }
 0x17b   :  { %2095 = vset.pattern.permute.xlu1 %v3875_v26  ;;  %2104 = vset.pattern.permute.xlu0 %v3875_v26 }
 0x17c   :  { %1270 = vperm.xlu1 %2095, %v2192_v2   ;;  %v2895_v27 = vpop.permute.xlu1 %794  ;;  %1274 = vperm.xlu0 %2104, %v2204_v4  }
 0x17d   :  { %v2898_v8 = vpop.permute.xlu0 %882 }
 0x17e   :  { %3949 = vst [vmem:[#allocation68_spill] sm:$0xff] %v2898_v8 }
 0x180   :  { %1334 = vperm.xlu1 %2095, %v2288_v18   ;;  %v2901_v54 = vpop.permute.xlu1 %802  ;;  %1278 = vperm.xlu0 %2104, %v2187_v1  }
 0x181   :  { %v2904_v10 = vpop.permute.xlu0 %894 }
 0x182   :  { %3950 = vst [vmem:[#allocation69_spill] sm:$0xff] %v2904_v10 }
 0x184   :  { %1338 = vperm.xlu1 %2095, %v2283_v17   ;;  %1342 = vperm.xlu0 %2104, %v2300_v20  }
 0x185   :  { %v2908_v26 = vpop.permute.xlu1 %878  ;;  %v2910_v2 = vpop.permute.xlu0 %902 }
 0x186   :  { %3951 = vst [vmem:[#allocation70_spill] sm:$0xff] %v2908_v26  ;;  %3952 = vst [vmem:[#allocation71_spill] sm:$0xff] %v2910_v2 }
 0x188   :  { %1282 = vperm.xlu1 %2095, %v2199_v3   ;;  %1350 = vperm.xlu0 %2104, %v2312_v22  }
 0x189   :  { %v2914_v8 = vpop.permute.xlu1 %886  ;;  %v2916_v36 = vpop.permute.xlu0 %910 }
 0x18a   :  { %3953 = vst [vmem:[#allocation72_spill] sm:$0xff] %v2914_v8  ;;  %3954 = vst [vmem:[#allocation73_spill] sm:$0xff] %v2916_v36  ;;  %v3959_v36 = vmov 5  }
 0x18c   :  { %1346 = vperm.xlu1 %2095, %v2295_v19   ;;  %1298 = vperm.xlu0 %2104, %v2223_v7  }
 0x18d   :  { %v2920_v10 = vpop.permute.xlu1 %890  ;;  %v2922_v17 = vpop.permute.xlu0 %918 }
 0x18e   :  { %3955 = vst [vmem:[#allocation74_spill] sm:$0xff] %v2920_v10  ;;  %v3961_v10 = vmov 6  }
 0x190   :  { %2096 = vset.pattern.permute.xlu1 %v3877_v57  ;;  %1362 = vperm.xlu0 %2104, %v2319_v23  }
 0x191   :  { %1470 = vperm.xlu1 %2096, %v2204_v4   ;;  %v2927_v3 = vpop.permute.xlu1 %898  ;;  %v2929_v22 = vpop.permute.xlu0 %926  ;;  %v2108_v4 = vld [vmem:[%s3870_s3 + $0x38] sm:$0xff]  }
 0x192   :  { %3956 = vst [vmem:[#allocation75_spill] sm:$0xff] %v2927_v3  ;;  %2011 = vmatprep.subr.bf16.mxu0 %v2108_v4  ;;  %2059 = vmatprep.subr.bf16.mxu1 %v2108_v4 }
 0x193   :  { %2012 = vmatpush3.bf16.msra.mxu0 %v2108_v4  ;;  %2067 = vmatpush3.bf16.msra.mxu1 %v2108_v4 }
 0x194   :  { %1306 = vperm.xlu0 %2104, %v2235_v9  }
 0x195   :  { %1530 = vperm.xlu1 %2096, %v2288_v18   ;;  %v2933_v7 = vpop.permute.xlu1 %906  ;;  %v2935_v19 = vpop.permute.xlu0 %934 }
 0x196   :  { %3957 = vst [vmem:[#allocation76_spill] sm:$0xff] %v2933_v7  ;;  %v2110_v7 = vld [vmem:[%s3870_s3 + $0x28] sm:$0xff]  }
 0x198   :  { %1310 = vperm.xlu0 %2104, %v2252_v12   ;;  %v2109_v12 = vld [vmem:[%s3870_s3 + $0x30] sm:$0xff]  }
 0x199   :  { %1474 = vperm.xlu1 %2096, %v2187_v1   ;;  %v2939_v57 = vpop.permute.xlu1 %914  ;;  %v2941_v23 = vpop.permute.xlu0 %942  ;;  %v811_v1 = vsub.s32 3, %v2422_v42  ;;  %2013 = vmatprep.subr.bf16.mxu0 %v2109_v12 }
 0x19a   :  { %3958 = vst [vmem:[#allocation77_spill] sm:$0xff] %v2941_v23  ;;  %2014 = vmatpush3.bf16.msra.mxu0 %v2109_v12  ;;  %2060 = vmatprep.subr.bf16.mxu1 %v2109_v12 }
 0x19b   :  { %v2967_v3 = vrot.slane %v2436_v46, %v811_v1  ;;  %2068 = vmatpush3.bf16.msra.mxu1 %v2109_v12  ;;  %2015 = vmatprep.subr.bf16.mxu0 %v2110_v7  ;;  %v2981_v1 = vld [vmem:[%s3867_s0 + $0x20] sm:$0xff] }
 0x19c   :  { %1374 = vperm.xlu0 %2104, %v2348_v28   ;;  %2061 = vmatprep.subr.bf16.mxu1 %v2110_v7 }
 0x19d   :  { %1538 = vperm.xlu1 %2096, %v2300_v20   ;;  %v2948_v9 = vpop.permute.xlu1 %922  ;;  %v2950_v18 = vpop.permute.xlu0 %950  ;;  %v839_v26 = vmul.f32 %v2967_v3, %v2888_v6 }
 0x19e   :  { %2016 = vmatpush3.bf16.msra.mxu0 %v2110_v7 }
 0x19f   :  { %2069 = vmatpush3.bf16.msra.mxu1 %v2110_v7  ;;  %v2112_v7 = vld [vmem:[%s3870_s3 + $0x18] sm:$0xff]  }
 0x1a0   :  { %1318 = vperm.xlu0 %2104, %v2264_v14   ;;  %v1007_v14 = vsub.s32 4, %v2422_v42 }
 0x1a1   :  { %2097 = vset.pattern.permute.xlu1 %v3959_v36  ;;  %v2958_v28 = vpop.permute.xlu1 %930  ;;  %v2960_v20 = vpop.permute.xlu0 %958 }
 0x1a2   :  { %1162 = vperm.xlu1 %2097, %v2324_v24   ;;  %v837_v24 = vmul.f32 %v2967_v3, %v2882_v21  ;;  %v2988_v12 = vrot.slane %v2436_v46, %v1007_v14  ;;  %v2993_v21 = vld [vmem:[%s3867_s0 + $0x78] sm:$0xff] }
 0x1a3   :  { %3962 = vst [vmem:[#allocation79_spill] sm:$0xff] %v2993_v21 }
 0x1a4   :  { %1386 = vperm.xlu0 %2104, %v2355_v29   ;;  %v2111_v29 = vld [vmem:[%s3870_s3 + $0x20] sm:$0xff]   ;;  %v869_v2 = vadd.f32 %v837_v24, %v2760_v51  ;;  %v841_v24 = vmul.f32 %v2967_v3, %v2895_v27 }
 0x1a5   :  { %v2971_v4 = vpop.permute.xlu1 %938  ;;  %v2973_v23 = vpop.permute.xlu0 %966  ;;  %2017 = vmatprep.subr.bf16.mxu0 %v2111_v29  ;;  %2062 = vmatprep.subr.bf16.mxu1 %v2111_v29 }
 0x1a6   :  { %3960 = vst [vmem:[#allocation78_spill] sm:$0xff] %v2973_v23  ;;  %2098 = vset.pattern.permute.xlu1 %v3961_v10  ;;  %2018 = vmatpush3.bf16.msra.mxu0 %v2111_v29 }
 0x1a7   :  { %1286 = vperm.xlu1 %2098, %v2981_v1   ;;  %2070 = vmatpush3.bf16.msra.mxu1 %v2111_v29 }
 0x1a8   :  { %1330 = vperm.xlu0 %2104, %v2993_v21   ;;  %2019 = vmatprep.subr.bf16.mxu0 %v2112_v7 }
 0x1a9   :  { %v2996_v23 = vpop.permute.xlu1 %946  ;;  %v975_v8 = vpop.permute.xlu0 %974  ;;  %2063 = vmatprep.subr.bf16.mxu1 %v2112_v7 }
 0x1aa   :  { %3963 = vst [vmem:[#allocation80_spill] sm:$0xff] %v2996_v23  ;;  %v1033_v14 = vmul.f32 %v2988_v12, %v975_v8  ;;  %v871_v8 = vadd.f32 %v839_v26, %v2768_v63  ;;  %2020 = vmatpush3.bf16.msra.mxu0 %v2112_v7  ;;  %v2120_v26 = vld [vmem:[%s3867_s0] sm:$0xff] }
 0x1ab   :  { %1290 = vperm.xlu1 %2098, %v3005_v34   ;;  %2071 = vmatpush3.bf16.msra.mxu1 %v2112_v7  ;;  %v2121_v7 = vld [vmem:[%s3867_s0 + $0x30] sm:$0xff] }
 0x1ac   :  { %v3011_v21 = vadd.f32 %v1033_v14, %v869_v2  ;;  %1394 = vperm.xlu0 %2104, %v2367_v31   ;;  %v2119_v2 = vld [vmem:[%s3867_s0 + $0xa8] sm:$0xff]  ;;  %v2113_v31 = vld [vmem:[%s3870_s3 + $0x10] sm:$0xff]   ;;  %v3966_v14 = vmov 7  }
 0x1ad   :  { %v3014_v51 = vpop.permute.xlu1 %954  ;;  %v983_v6 = vpop.permute.xlu0 %982  ;;  %2021 = vmatprep.subr.bf16.mxu0 %v2113_v31  ;;  %2064 = vmatprep.subr.bf16.mxu1 %v2113_v31 }
 0x1ae   :  { %3964 = vst [vmem:[#allocation81_spill] sm:$0xff] %v3014_v51  ;;  %v1035_v23 = vmul.f32 %v2988_v12, %v983_v6  ;;  %v873_v6 = vadd.f32 %v841_v24, %v2778_v47  ;;  %v843_v51 = vmul.f32 %v2967_v3, %v2901_v54  ;;  %2022 = vmatpush3.bf16.msra.mxu0 %v2113_v31  ;;  %v2122_v54 = vld [vmem:[%s3867_s0 + $0x88] sm:$0xff] }
 0x1af   :  { %1354 = vperm.xlu1 %2098, %v2119_v2   ;;  %2072 = vmatpush3.bf16.msra.mxu1 %v2113_v31  ;;  %v2115_v31 = vld [vmem:[%s3870_s3] sm:$0xff]  }
 0x1b0   :  { %v3026_v29 = vadd.f32 %v1035_v23, %v871_v8  ;;  %2106 = vset.pattern.permute.xlu0 %v3966_v14  ;;  %v2114_v8 = vld [vmem:[%s3870_s3 + $0x8] sm:$0xff]  }
 0x1b1   :  { %v3029_v63 = vpop.permute.xlu1 %962  ;;  %1466 = vperm.xlu0 %2106, %v2120_v26   ;;  %v991_v27 = vpop.permute.xlu0 %990  ;;  %2023 = vmatprep.subr.bf16.mxu0 %v2114_v8 }
 0x1b2   :  { %3965 = vst [vmem:[#allocation82_spill] sm:$0xff] %v3026_v29  ;;  %3967 = vst [vmem:[#allocation83_spill] sm:$0xff] %v3029_v63  ;;  %v1037_v23 = vmul.f32 %v2988_v12, %v991_v27  ;;  %v875_v27 = vadd.f32 %v843_v51, %v2788_v41  ;;  %2024 = vmatpush3.bf16.msra.mxu0 %v2114_v8  ;;  %2065 = vmatprep.subr.bf16.mxu1 %v2114_v8  ;;  %v2124_v41 = vld [vmem:[%s3867_s0 + $0x18] sm:$0xff] }
 0x1b3   :  { %1294 = vperm.xlu1 %2098, %v2121_v7   ;;  %2073 = vmatpush3.bf16.msra.mxu1 %v2114_v8  ;;  %v2125_v8 = vld [vmem:[%s3867_s0 + $0x98] sm:$0xff] }
 0x1b4   :  { %v3044_v26 = vadd.f32 %v1037_v23, %v873_v6  ;;  %v2123_v6 = vld [vmem:[%s3867_s0 + $0xb0] sm:$0xff]  ;;  %2025 = vmatprep.subr.bf16.mxu0 %v2115_v31  ;;  %2066 = vmatprep.subr.bf16.mxu1 %v2115_v31 }
 0x1b5   :  { %v3046_v47 = vpop.permute.xlu1 %970  ;;  %1534 = vperm.xlu0 %2106, %v2122_v54   ;;  %v999_v24 = vpop.permute.xlu0 %998 }
 0x1b6   :  { %3968 = vst [vmem:[#allocation84_spill] sm:$0xff] %v3044_v26  ;;  %3969 = vst [vmem:[#allocation85_spill] sm:$0xff] %v3046_v47  ;;  %v1039_v29 = vmul.f32 %v2988_v12, %v999_v24  ;;  %2026 = vmatpush3.bf16.msra.mxu0 %v2115_v31  ;;  %v1203_v26 = vsub.s32 5, %v2422_v42 }
 0x1b7   :  { %1358 = vperm.xlu1 %2098, %v2123_v6   ;;  %2074 = vmatpush3.bf16.msra.mxu1 %v2115_v31 }
 0x1b8   :  { %v3059_v23 = vadd.f32 %v1039_v29, %v875_v27  ;;  %v2126_v27 = vld [vmem:[%s3867_s0 + $0xa0] sm:$0xff] }
 0x1b9   :  { %v3061_v54 = vpop.permute.xlu1 %978  ;;  %1478 = vperm.xlu0 %2106, %v2124_v41  }
 0x1ba   :  { %3970 = vst [vmem:[#allocation86_spill] sm:$0xff] %v3059_v23  ;;  %3971 = vst [vmem:[#allocation87_spill] sm:$0xff] %v3061_v54  ;;  %v3066_v51 = vpop.permute.xlu0 %1074 }
 0x1bb   :  { %2099 = vset.pattern.permute.xlu1 %v3966_v14 }
 0x1bc   :  { %1482 = vperm.xlu1 %2099, %v2981_v1  }
 0x1bd   :  { %v3070_v29 = vpop.permute.xlu1 %986  ;;  %1542 = vperm.xlu0 %2106, %v2125_v8   ;;  %v2127_v8 = vld [vmem:[%s3867_s0 + $0x38] sm:$0xff] }
 0x1be   :  { %v3075_v24 = vpop.permute.xlu0 %1086 }
 0x1bf   :  { %3972 = vst [vmem:[#allocation88_spill] sm:$0xff] %v3075_v24 }
 0x1c0   :  { %1546 = vperm.xlu1 %2099, %v2126_v27   ;;  %v824_v27 = vmul.f32 %v2967_v3, %v2830_v5  ;;  %v826_v5 = vmul.f32 %v2967_v3, %v2836_v50 }
 0x1c1   :  { %v3080_v41 = vpop.permute.xlu1 %994  ;;  %1486 = vperm.xlu0 %2106, %v3005_v34  }
 0x1c2   :  { %v3083_v1 = vpop.permute.xlu0 %1094  ;;  %v858_v50 = vadd.f32 %v826_v5, %v2732_v39 }
 0x1c3   :  { %3973 = vst [vmem:[#allocation89_spill] sm:$0xff] %v3083_v1 }
 0x1c4   :  { %1550 = vperm.xlu1 %2099, %v2119_v2   ;;  %v1020_v2 = vmul.f32 %v2988_v12, %v2948_v9 }
 0x1c5   :  { %v3085_v31 = vpop.permute.xlu1 %1002  ;;  %1490 = vperm.xlu0 %2106, %v2121_v7   ;;  %v2128_v7 = vld [vmem:[%s3867_s0 + $0xb8] sm:$0xff] }
 0x1c6   :  { %3974 = vst [vmem:[#allocation90_spill] sm:$0xff] %v3085_v31  ;;  %v3087_v23 = vpop.permute.xlu0 %1102  ;;  %v3108_v31 = vrot.slane %v2436_v46, %v1203_v26  ;;  %v828_v46 = vmul.f32 %v2967_v3, %v2842_v43 }
 0x1c7   :  { %3975 = vst [vmem:[#allocation91_spill] sm:$0xff] %v3087_v23 }
 0x1c8   :  { %1494 = vperm.xlu1 %2099, %v2127_v8   ;;  %v856_v8 = vadd.f32 %v824_v27, %v2721_v60  ;;  %v2130_v27 = vld [vmem:[%s3867_s0 + $0xc8] sm:$0xff]  ;;  %v860_v5 = vadd.f32 %v828_v46, %v2740_v37  ;;  %v823_v46 = vmul.f32 %v2967_v3, %v2840_v48  ;;  %v825_v48 = vmul.f32 %v2967_v3, %v2846_v32 }
 0x1c9   :  { %1554 = vperm.xlu0 %2106, %v2123_v6   ;;  %v2129_v6 = vld [vmem:[%s3867_s0 + $0x40] sm:$0xff]  ;;  %v1021_v32 = vmul.f32 %v2988_v12, %v2929_v22 }
 0x1ca   :  { %v3095_v34 = vpop.permute.xlu1 %1078  ;;  %v3097_v54 = vpop.permute.xlu0 %1110  ;;  %v1052_v47 = vadd.f32 %v1020_v2, %v856_v8 }
 0x1cc   :  { %1558 = vperm.xlu1 %2099, %v2128_v7   ;;  %v1022_v7 = vmul.f32 %v2988_v12, %v2958_v28 }
 0x1cd   :  { %1498 = vperm.xlu0 %2106, %v2129_v6  }
 0x1ce   :  { %v3113_v23 = vpop.permute.xlu1 %1082  ;;  %v1119_v9 = vpop.permute.xlu0 %1118  ;;  %v1054_v8 = vadd.f32 %v1022_v7, %v858_v50  ;;  %v2132_v7 = vld [vmem:[%s3867_s0 + $0x58] sm:$0xff] }
 0x1cf   :  { %3976 = vst [vmem:[#allocation92_spill] sm:$0xff] %v3113_v23  ;;  %v1216_v60 = vmul.f32 %v3108_v31, %v1119_v9  ;;  %v1024_v9 = vmul.f32 %v2988_v12, %v2971_v4 }
 0x1d0   :  { %2100 = vset.pattern.permute.xlu1 %v3959_v36 }
 0x1d1   :  { %v3122_v26 = vadd.f32 %v1216_v60, %v1052_v47  ;;  %1174 = vperm.xlu1 %2100, %v2130_v27   ;;  %1566 = vperm.xlu0 %2106, %v2130_v27   ;;  %v3138_v47 = vld [vmem:[%s3867_s0 + $0xd0] sm:$0xff]  ;;  %v1056_v50 = vadd.f32 %v1024_v9, %v860_v5  ;;  %v1019_v9 = vmul.f32 %v2988_v12, %v2922_v17 }
 0x1d2   :  { %v3127_v2 = vpop.permute.xlu1 %1090  ;;  %v1127_v28 = vpop.permute.xlu0 %1126  ;;  %v855_v5 = vadd.f32 %v823_v46, %v2706_v62  ;;  %v857_v46 = vadd.f32 %v825_v48, %v2714_v59 }
 0x1d3   :  { %3977 = vst [vmem:[#allocation93_spill] sm:$0xff] %v3122_v26  ;;  %3978 = vst [vmem:[#allocation94_spill] sm:$0xff] %v3127_v2  ;;  %v1218_v39 = vmul.f32 %v3108_v31, %v1127_v28  ;;  %v827_v26 = vmul.f32 %v2967_v3, %v2852_v11  ;;  %v1023_v11 = vmul.f32 %v2988_v12, %v2935_v19  ;;  %v3213_v19 = vld [vmem:[%s3869_s2] ss:$0 sm:$0xff] }
 0x1d4   :  { %v1051_v62 = vadd.f32 %v1019_v9, %v855_v5  ;;  %v236_v9 = vmul.f32 %v2443_v49, %v2490_v53  ;;  %v1053_v59 = vadd.f32 %v1021_v32, %v857_v46  ;;  %v3207_v53 = vld [vmem:[%s3867_s0 + $0xf0] sm:$0xff]  ;;  %3985 = vst [vmem:[#allocation101_spill] sm:$0xff] %v3213_v19 }
 0x1d5   :  { %v3133_v43 = vadd.f32 %v1218_v39, %v1054_v8  ;;  %1178 = vperm.xlu1 %2100, %v3138_v47   ;;  %1510 = vperm.xlu0 %2106, %v2132_v7   ;;  %v2133_v8 = vld [vmem:[%s3867_s0 + $0xd8] sm:$0xff] }
 0x1d6   :  { %v3144_v60 = vpop.permute.xlu1 %1098  ;;  %v1135_v4 = vpop.permute.xlu0 %1134 }
 0x1d7   :  { %3979 = vst [vmem:[#allocation95_spill] sm:$0xff] %v3133_v43  ;;  %3980 = vst [vmem:[#allocation96_spill] sm:$0xff] %v3144_v60  ;;  %v1220_v37 = vmul.f32 %v3108_v31, %v1135_v4  ;;  %v3167_v4 = vld [vmem:[%s3867_s0 + $0x68] sm:$0xff]  ;;  %v3189_v60 = vld [vmem:[%s3867_s0 + $0x70] sm:$0xff] }
 0x1d9   :  { %v3149_v28 = vadd.f32 %v1220_v37, %v1056_v50  ;;  %2101 = vset.pattern.permute.xlu1 %v3961_v10  ;;  %1574 = vperm.xlu0 %2106, %v2133_v8  }
 0x1da   :  { %1302 = vperm.xlu1 %2101, %v2129_v6   ;;  %v3155_v39 = vpop.permute.xlu1 %1106  ;;  %v3157_v43 = vpop.permute.xlu0 %1142  ;;  %v3173_v6 = vld [vmem:[%s3867_s0 + $0xc0] sm:$0xff] }
 0x1db   :  { %3981 = vst [vmem:[#allocation97_spill] sm:$0xff] %v3155_v39  ;;  %3982 = vst [vmem:[#allocation98_spill] sm:$0xff] %v3157_v43 }
 0x1dd   :  { %1518 = vperm.xlu0 %2106, %v3167_v4  }
 0x1de   :  { %1366 = vperm.xlu1 %2101, %v3173_v6   ;;  %v1115_v17 = vpop.permute.xlu1 %1114  ;;  %v3176_v50 = vpop.permute.xlu0 %1150 }
 0x1df   :  { %3983 = vst [vmem:[#allocation99_spill] sm:$0xff] %v3176_v50  ;;  %v1215_v37 = vmul.f32 %v3108_v31, %v1115_v17  ;;  %v439_v17 = vmul.f32 %v2576_v40, %v2616_v61  ;;  %v238_v61 = vmul.f32 %v2443_v49, %v2496_v58  ;;  %v840_v58 = vmul.f32 %v2967_v3, %v2878_v13  ;;  %v3990_v50 = vld [vmem:[#allocation49_spill] sm:$0xff] }
 0x1e1   :  { %v3184_v39 = vadd.f32 %v1215_v37, %v1051_v62  ;;  %1522 = vperm.xlu0 %2106, %v3189_v60   ;;  %v859_v62 = vadd.f32 %v827_v26, %v2724_v0  ;;  %v3986_v0 = vld [vmem:[#allocation47_spill] sm:$0xff] }
 0x1e2   :  { %1370 = vperm.xlu1 %2101, %v2130_v27   ;;  %v1123_v22 = vpop.permute.xlu1 %1122  ;;  %v3194_v5 = vpop.permute.xlu0 %1158  ;;  %v275_v27 = vadd.f32 %v3213_v19, %v236_v9  ;;  %v635_v26 = vmul.f32 %v2698_v38, %v3986_v0  ;;  %v831_v9 = vmul.f32 %v2967_v3, %v2864_v15  ;;  %v1036_v15 = vmul.f32 %v2988_v12, %v3070_v29 }
 0x1e3   :  { %3984 = vst [vmem:[#allocation100_spill] sm:$0xff] %v3194_v5  ;;  %v1217_v48 = vmul.f32 %v3108_v31, %v1123_v22  ;;  %v1055_v22 = vadd.f32 %v1023_v11, %v859_v62  ;;  %v3988_v5 = vld [vmem:[#allocation32_spill] sm:$0xff]  ;;  %v637_v11 = vmul.f32 %v2698_v38, %v3990_v50  ;;  %v842_v50 = vmul.f32 %v2967_v3, %v2884_v16 }
 0x1e4   :  { %v441_v1 = vmul.f32 %v2576_v40, %v3988_v5  ;;  %v1029_v29 = vmul.f32 %v2988_v12, %v2960_v20 }
 0x1e5   :  { %v3202_v37 = vadd.f32 %v1217_v48, %v1053_v59  ;;  %1586 = vperm.xlu0 %2106, %v3207_v53   ;;  %v471_v48 = vadd.f32 %v439_v17, %v275_v27  ;;  %v1027_v17 = vmul.f32 %v2988_v12, %v2950_v18  ;;  %v874_v20 = vadd.f32 %v842_v50, %v2796_v45  ;;  %v2140_v45 = vld [vmem:[%s3867_s0 + $0x50] sm:$0xff] }
 0x1e6   :  { %1314 = vperm.xlu1 %2101, %v2132_v7   ;;  %v1131_v32 = vpop.permute.xlu1 %1130  ;;  %v3220_v46 = vpop.permute.xlu0 %1166  ;;  %v277_v7 = vadd.f32 %v3213_v19, %v238_v61  ;;  %v833_v61 = vmul.f32 %v2967_v3, %v2870_v56  ;;  %v1038_v56 = vmul.f32 %v2988_v12, %v3080_v41 }
 0x1e7   :  { %3987 = vst [vmem:[#allocation47_spill] sm:$0xff] %v3220_v46  ;;  %v1219_v59 = vmul.f32 %v3108_v31, %v1131_v32  ;;  %v667_v0 = vadd.f32 %v635_v26, %v471_v48  ;;  %v872_v26 = vadd.f32 %v840_v58, %v2785_v35  ;;  %v4017_v46 = vld [vmem:[#allocation45_spill] sm:$0xff] }
 0x1e8   :  { %v473_v27 = vadd.f32 %v441_v1, %v277_v7  ;;  %v1070_v41 = vadd.f32 %v1038_v56, %v874_v20  ;;  %v4007_v20 = vld [vmem:[#allocation6_spill] sm:$0xff] }
 0x1e9   :  { %v3229_v2 = vadd.f32 %v1219_v59, %v1055_v22  ;;  %v863_v32 = vadd.f32 %v831_v9, %v667_v0  ;;  %v1068_v48 = vadd.f32 %v1036_v15, %v872_v26 }
 0x1ea   :  { %1378 = vperm.xlu1 %2101, %v2133_v8   ;;  %v3236_v62 = vpop.permute.xlu1 %1138  ;;  %v1171_v5 = vpop.permute.xlu0 %1170  ;;  %v669_v8 = vadd.f32 %v637_v11, %v473_v27 }
 0x1eb   :  { %3989 = vst [vmem:[#allocation32_spill] sm:$0xff] %v3229_v2  ;;  %3991 = vst [vmem:[#allocation49_spill] sm:$0xff] %v3236_v62  ;;  %v1229_v13 = vmul.f32 %v3108_v31, %v1171_v5  ;;  %v1059_v22 = vadd.f32 %v1027_v17, %v863_v32 }
 0x1ec   :  { %v865_v9 = vadd.f32 %v833_v61, %v669_v8 }
 0x1ed   :  { %v3247_v18 = vadd.f32 %v1229_v13, %v3011_v21  ;;  %v2139_v21 = vld [vmem:[%s3867_s0 + $0x48] sm:$0xff] }
 0x1ee   :  { %2102 = vset.pattern.permute.xlu1 %v3966_v14  ;;  %v1147_v1 = vpop.permute.xlu1 %1146  ;;  %v1183_v59 = vpop.permute.xlu0 %1182  ;;  %v1061_v17 = vadd.f32 %v1029_v29, %v865_v9 }
 0x1ef   :  { %3992 = vst [vmem:[#allocation102_spill] sm:$0xff] %v3247_v18  ;;  %v1223_v35 = vmul.f32 %v3108_v31, %v1147_v1  ;;  %v1232_v16 = vmul.f32 %v3108_v31, %v1183_v59  ;;  %1502 = vperm.xlu1 %2102, %v2139_v21   ;;  %v4003_v1 = vld [vmem:[#allocation3_spill] sm:$0xff] }
 0x1f0   :  { %v218_v59 = vmul.f32 %v2443_v49, %v4003_v1  ;;  %v4012_v1 = vld [vmem:[#allocation28_spill] sm:$0xff]  ;;  %v4016_v18 = vld [vmem:[#allocation15_spill] sm:$0xff] }
 0x1f1   :  { %v3260_v58 = vadd.f32 %v1223_v35, %v1059_v22  ;;  %v3262_v7 = vadd.f32 %v1232_v16, %v1068_v48  ;;  %v4004_v48 = vld [vmem:[#allocation4_spill] sm:$0xff]  ;;  %v4005_v35 = vld [vmem:[#allocation5_spill] sm:$0xff]  ;;  %v4006_v16 = vld [vmem:[#allocation10_spill] sm:$0xff] }
 0x1f2   :  { %v1155_v0 = vpop.permute.xlu1 %1154  ;;  %v1191_v11 = vpop.permute.xlu0 %1190  ;;  %v221_v56 = vmul.f32 %v2443_v49, %v4004_v48  ;;  %v227_v21 = vmul.f32 %v2443_v49, %v4006_v16  ;;  %v430_v48 = vmul.f32 %v2576_v40, %v4012_v1  ;;  %v237_v1 = vmul.f32 %v2443_v49, %v4016_v18 }
 0x1f3   :  { %3993 = vst [vmem:[#allocation103_spill] sm:$0xff] %v3260_v58  ;;  %3994 = vst [vmem:[#allocation104_spill] sm:$0xff] %v3262_v7  ;;  %v1225_v5 = vmul.f32 %v3108_v31, %v1155_v0  ;;  %v1234_v15 = vmul.f32 %v3108_v31, %v1191_v11  ;;  %1562 = vperm.xlu1 %2102, %v3173_v6   ;;  %v4000_v6 = vld [vmem:[#allocation2_spill] sm:$0xff]  ;;  %v223_v0 = vmul.f32 %v2443_v49, %v4007_v20  ;;  %v4014_v20 = vld [vmem:[#allocation13_spill] sm:$0xff] }
 0x1f4   :  { %v220_v8 = vmul.f32 %v2443_v49, %v4000_v6  ;;  %v235_v2 = vmul.f32 %v2443_v49, %v4014_v20  ;;  %v4019_v58 = vld [vmem:[#allocation17_spill] sm:$0xff] }
 0x1f5   :  { %v3267_v13 = vadd.f32 %v1225_v5, %v1061_v17  ;;  %v3269_v27 = vadd.f32 %v1234_v15, %v1070_v41  ;;  %v257_v41 = vadd.f32 %v3213_v19, %v218_v59  ;;  %v4010_v5 = vld [vmem:[#allocation7_spill] sm:$0xff]  ;;  %v4015_v59 = vld [vmem:[#allocation14_spill] sm:$0xff]  ;;  %v241_v20 = vmul.f32 %v2443_v49, %v4019_v58 }
 0x1f6   :  { %v3305_v9 = vadd.f32 %v3213_v19, %v220_v8  ;;  %v222_v15 = vmul.f32 %v2443_v49, %v4010_v5  ;;  %v260_v8 = vadd.f32 %v3213_v19, %v221_v56  ;;  %v234_v7 = vmul.f32 %v2443_v49, %v4015_v59 }
 0x1f7   :  { %3995 = vst [vmem:[#allocation105_spill] sm:$0xff] %v3267_v13  ;;  %1506 = vperm.xlu1 %2102, %v2140_v45   ;;  %v3274_v32 = vpop.permute.xlu1 %1270  ;;  %v3276_v61 = vpop.permute.xlu0 %1274  ;;  %v4011_v45 = vld [vmem:[#allocation8_spill] sm:$0xff]  ;;  %v626_v13 = vmul.f32 %v2698_v38, %v4017_v46  ;;  %v262_v56 = vadd.f32 %v3213_v19, %v223_v0  ;;  %v822_v0 = vmul.f32 %v2967_v3, %v2823_v52 }
 0x1f8   :  { %3996 = vst [vmem:[#allocation106_spill] sm:$0xff] %v3274_v32  ;;  %3997 = vst [vmem:[#allocation107_spill] sm:$0xff] %v3276_v61  ;;  %v225_v6 = vmul.f32 %v2443_v49, %v4011_v45  ;;  %v266_v45 = vadd.f32 %v3213_v19, %v227_v21  ;;  %v261_v18 = vadd.f32 %v3213_v19, %v222_v15  ;;  %v4024_v15 = vld [vmem:[#allocation19_spill] sm:$0xff] }
 0x1f9   :  { %v1018_v52 = vmul.f32 %v2988_v12, %v2939_v57  ;;  %v4039_v32 = vld [vmem:[#allocation35_spill] sm:$0xff] }
 0x1fa   :  { %v264_v63 = vadd.f32 %v3213_v19, %v225_v6  ;;  %v462_v46 = vadd.f32 %v430_v48, %v266_v45  ;;  %v422_v6 = vmul.f32 %v2576_v40, %v4024_v15  ;;  %v276_v48 = vadd.f32 %v3213_v19, %v237_v1  ;;  %v4027_v15 = vld [vmem:[#allocation21_spill] sm:$0xff] }
 0x1fb   :  { %1570 = vperm.xlu1 %2102, %v3138_v47   ;;  %v3279_v26 = vpop.permute.xlu1 %1334  ;;  %v3281_v50 = vpop.permute.xlu0 %1278  ;;  %v3295_v47 = vld [vmem:[%s3867_s0 + $0xe0] sm:$0xff]  ;;  %v423_v1 = vmul.f32 %v2576_v40, %v4027_v15 }
 0x1fc   :  { %3998 = vst [vmem:[#allocation108_spill] sm:$0xff] %v3279_v26  ;;  %3999 = vst [vmem:[#allocation109_spill] sm:$0xff] %v3281_v50  ;;  %v658_v45 = vadd.f32 %v626_v13, %v462_v46  ;;  %v4028_v13 = vld [vmem:[#allocation22_spill] sm:$0xff]  ;;  %v4032_v50 = vld [vmem:[#allocation25_spill] sm:$0xff] }
 0x1fd   :  { %v424_v46 = vmul.f32 %v2576_v40, %v4028_v13  ;;  %v427_v15 = vmul.f32 %v2576_v40, %v4032_v50 }
 0x1fe   :  { %v854_v57 = vadd.f32 %v822_v0, %v658_v45  ;;  %v4033_v0 = vld [vmem:[#allocation26_spill] sm:$0xff] }
 0x1ff   :  { %2103 = vset.pattern.permute.xlu1 %v3959_v36  ;;  %v3286_v22 = vpop.permute.xlu1 %1338  ;;  %v3288_v29 = vpop.permute.xlu0 %1342  ;;  %v219_v36 = vmul.f32 %v2443_v49, %v4005_v35  ;;  %v4013_v35 = vld [vmem:[#allocation9_spill] sm:$0xff]  ;;  %v428_v45 = vmul.f32 %v2576_v40, %v4033_v0 }
 0x200   :  { %4001 = vst [vmem:[#allocation2_spill] sm:$0xff] %v3286_v22  ;;  %4002 = vst [vmem:[#allocation110_spill] sm:$0xff] %v3288_v29  ;;  %1186 = vperm.xlu1 %2103, %v3295_v47   ;;  %v224_v16 = vmul.f32 %v2443_v49, %v4013_v35  ;;  %v4020_v29 = vld [vmem:[#allocation18_spill] sm:$0xff]  ;;  %v1050_v13 = vadd.f32 %v1018_v52, %v854_v57  ;;  %v4037_v0 = vld [vmem:[#allocation33_spill] sm:$0xff]  ;;  %v455_v52 = vadd.f32 %v423_v1, %v3305_v9 }
 0x201   :  { %v258_v5 = vadd.f32 %v3213_v19, %v219_v36  ;;  %v240_v59 = vmul.f32 %v2443_v49, %v4020_v29  ;;  %v274_v29 = vadd.f32 %v3213_v19, %v235_v2  ;;  %v4025_v2 = vld [vmem:[#allocation20_spill] sm:$0xff]  ;;  %v442_v23 = vmul.f32 %v2576_v40, %v4037_v0 }
 0x202   :  { %v263_v58 = vadd.f32 %v3213_v19, %v224_v16  ;;  %v456_v57 = vadd.f32 %v424_v46, %v260_v8  ;;  %v460_v62 = vadd.f32 %v428_v45, %v264_v63  ;;  %v4040_v46 = vld [vmem:[#allocation36_spill] sm:$0xff] }
 0x203   :  { %v3309_v11 = vpop.permute.xlu1 %1282  ;;  %v3311_v17 = vpop.permute.xlu0 %1350  ;;  %v279_v16 = vadd.f32 %v3213_v19, %v240_v59  ;;  %v4030_v59 = vld [vmem:[#allocation23_spill] sm:$0xff]  ;;  %v4047_v45 = vld [vmem:[#allocation44_spill] sm:$0xff] }
 0x204   :  { %4008 = vst [vmem:[#allocation3_spill] sm:$0xff] %v3309_v11  ;;  %4009 = vst [vmem:[#allocation4_spill] sm:$0xff] %v3311_v17  ;;  %1194 = vperm.xlu1 %2103, %v3207_v53   ;;  %v4018_v17 = vld [vmem:[#allocation16_spill] sm:$0xff]  ;;  %v280_v11 = vadd.f32 %v3213_v19, %v241_v20  ;;  %v454_v20 = vadd.f32 %v422_v6, %v258_v5  ;;  %v3394_v5 = vld [vmem:[%s3868_s1] sm:$0xff]  ;;  %v459_v0 = vadd.f32 %v427_v15, %v263_v58 }
 0x205   :  { %v239_v35 = vmul.f32 %v2443_v49, %v4018_v17  ;;  %v3352_v17 = vld [vmem:[%s3867_s0 + $0xf8] sm:$0xff]  ;;  %v273_v49 = vadd.f32 %v3213_v19, %v234_v7  ;;  %v421_v7 = vmul.f32 %v2576_v40, %v4025_v2  ;;  %v425_v2 = vmul.f32 %v2576_v40, %v4030_v59  ;;  %v4035_v59 = vld [vmem:[#allocation30_spill] sm:$0xff] }
 0x206   :  { %4023 = vst [vmem:[#allocation6_spill] sm:$0xff] %v3352_v17  ;;  %v438_v50 = vmul.f32 %v2576_v40, %v4035_v59 }
 0x207   :  { %v3341_v36 = vpop.permute.xlu1 %1346  ;;  %v3343_v21 = vpop.permute.xlu0 %1298 }
 0x208   :  { %4021 = vst [vmem:[#allocation5_spill] sm:$0xff] %v3341_v36  ;;  %4022 = vst [vmem:[#allocation10_spill] sm:$0xff] %v3343_v21  ;;  %1198 = vperm.xlu1 %2103, %v3352_v17   ;;  %v1399_v21 = vsub.s32 6, %v2422_v42  ;;  %v278_v36 = vadd.f32 %v3213_v19, %v239_v35  ;;  %v1214_v17 = vmul.f32 %v3108_v31, %v3097_v54  ;;  %v4031_v19 = vld [vmem:[#allocation24_spill] sm:$0xff]  ;;  %v4034_v54 = vld [vmem:[#allocation29_spill] sm:$0xff] }
 0x209   :  { %v470_v8 = vadd.f32 %v438_v50, %v274_v29  ;;  %v4048_v50 = vld [vmem:[#allocation46_spill] sm:$0xff] }
 0x20a   :  { %v3397_v6 = vrot.slane %v3394_v5, %v1399_v21  ;;  %v1246_v26 = vadd.f32 %v1214_v17, %v1050_v13  ;;  %v457_v21 = vadd.f32 %v425_v2, %v261_v18  ;;  %v474_v1 = vadd.f32 %v442_v23, %v278_v36  ;;  %v4042_v13 = vld [vmem:[#allocation38_spill] sm:$0xff]  ;;  %v4044_v23 = vld [vmem:[#allocation40_spill] sm:$0xff]  ;;  %v4045_v36 = vld [vmem:[#allocation41_spill] sm:$0xff] }
 0x20b   :  { %v3369_v24 = vpop.permute.xlu0 %1362  ;;  %v617_v18 = vmul.f32 %v2698_v38, %v4040_v46  ;;  %v623_v29 = vmul.f32 %v2698_v38, %v4045_v36  ;;  %v4050_v46 = vld [vmem:[#allocation50_spill] sm:$0xff] }
 0x20c   :  { %4026 = vst [vmem:[#allocation7_spill] sm:$0xff] %v3369_v24  ;;  %2105 = vset.pattern.permute.xlu1 %v3961_v10  ;;  %v3378_v35 = vpop.permute.xlu1 %1470  ;;  %v426_v24 = vmul.f32 %v2576_v40, %v4031_v19  ;;  %v437_v10 = vmul.f32 %v2576_v40, %v4034_v54  ;;  %v453_v19 = vadd.f32 %v421_v7, %v257_v41  ;;  %v4038_v7 = vld [vmem:[#allocation34_spill] sm:$0xff] }
 0x20d   :  { %4029 = vst [vmem:[#allocation8_spill] sm:$0xff] %v3378_v35  ;;  %1322 = vperm.xlu1 %2105, %v3167_v4   ;;  %v4036_v4 = vld [vmem:[#allocation31_spill] sm:$0xff]  ;;  %v443_v59 = vmul.f32 %v2576_v40, %v4038_v7  ;;  %v633_v7 = vmul.f32 %v2698_v38, %v4048_v50 }
 0x20e   :  { %v440_v22 = vmul.f32 %v2576_v40, %v4036_v4  ;;  %v458_v41 = vadd.f32 %v426_v24, %v262_v56  ;;  %v444_v4 = vmul.f32 %v2576_v40, %v4039_v32  ;;  %v469_v61 = vadd.f32 %v437_v10, %v273_v49  ;;  %v4041_v56 = vld [vmem:[#allocation37_spill] sm:$0xff] }
 0x20f   :  { %v1307_v54 = vpop.permute.xlu0 %1306  ;;  %v618_v2 = vmul.f32 %v2698_v38, %v4041_v56  ;;  %v619_v32 = vmul.f32 %v2698_v38, %v4042_v13  ;;  %v624_v10 = vmul.f32 %v2698_v38, %v4047_v45 }
 0x210   :  { %v1410_v43 = vmul.f32 %v3397_v6, %v1307_v54  ;;  %v3407_v35 = vpop.permute.xlu1 %1530  ;;  %v472_v17 = vadd.f32 %v440_v22, %v276_v48  ;;  %v4043_v54 = vld [vmem:[#allocation39_spill] sm:$0xff]  ;;  %v620_v22 = vmul.f32 %v2698_v38, %v4044_v23  ;;  %v4046_v48 = vld [vmem:[#allocation42_spill] sm:$0xff] }
 0x211   :  { %1382 = vperm.xlu1 %2105, %v3295_v47   ;;  %v621_v58 = vmul.f32 %v2698_v38, %v4043_v54  ;;  %v622_v15 = vmul.f32 %v2698_v38, %v4046_v48  ;;  %v650_v54 = vadd.f32 %v618_v2, %v454_v20  ;;  %v651_v23 = vadd.f32 %v619_v32, %v455_v52  ;;  %v4052_v48 = vld [vmem:[#allocation52_spill] sm:$0xff] }
 0x212   :  { %v3414_v9 = vadd.f32 %v1410_v43, %v1246_v26  ;;  %v475_v43 = vadd.f32 %v443_v59, %v279_v16  ;;  %v476_v26 = vadd.f32 %v444_v4, %v280_v11  ;;  %v649_v11 = vadd.f32 %v617_v18, %v453_v19  ;;  %v4049_v59 = vld [vmem:[#allocation48_spill] sm:$0xff] }
 0x213   :  { %v1311_v24 = vpop.permute.xlu0 %1310  ;;  %v634_v4 = vmul.f32 %v2698_v38, %v4049_v59  ;;  %v653_v36 = vadd.f32 %v621_v58, %v457_v21  ;;  %v638_v45 = vmul.f32 %v2698_v38, %v4052_v48  ;;  %v652_v19 = vadd.f32 %v620_v22, %v456_v57 }
 0x214   :  { %v1411_v49 = vmul.f32 %v3397_v6, %v1311_v24  ;;  %v3425_v63 = vpop.permute.xlu1 %1474  ;;  %v636_v24 = vmul.f32 %v2698_v38, %v4050_v46  ;;  %v655_v18 = vadd.f32 %v623_v29, %v459_v0  ;;  %v813_v59 = vmul.f32 %v2967_v3, %v2793_v30  ;;  %v4057_v29 = vld [vmem:[#allocation60_spill] sm:$0xff] }
 0x215   :  { %1326 = vperm.xlu1 %2105, %v3189_v60   ;;  %v4051_v60 = vld [vmem:[#allocation51_spill] sm:$0xff]  ;;  %v654_v46 = vadd.f32 %v622_v15, %v458_v41  ;;  %v665_v20 = vadd.f32 %v633_v7, %v469_v61  ;;  %v816_v52 = vmul.f32 %v2967_v3, %v2802_v33  ;;  %v666_v21 = vadd.f32 %v634_v4, %v470_v8  ;;  %v4054_v41 = vld [vmem:[#allocation56_spill] sm:$0xff]  ;;  %v4055_v8 = vld [vmem:[#allocation57_spill] sm:$0xff] }
 0x216   :  { %v3439_v16 = vadd.f32 %v1411_v49, %v3184_v39  ;;  %v639_v56 = vmul.f32 %v2698_v38, %v4051_v60  ;;  %v4053_v49 = vld [vmem:[#allocation53_spill] sm:$0xff]  ;;  %v656_v60 = vadd.f32 %v624_v10, %v460_v62  ;;  %v668_v2 = vadd.f32 %v636_v24, %v472_v17  ;;  %v2144_v15 = vld [vmem:[%s3867_s0 + $0x60] sm:$0xff]  ;;  %v4060_v24 = vld [vmem:[#allocation63_spill] sm:$0xff] }
 0x217   :  { %v3447_v13 = vpop.permute.xlu0 %1374  ;;  %v640_v50 = vmul.f32 %v2698_v38, %v4053_v49  ;;  %v814_v57 = vmul.f32 %v2967_v3, %v2809_v55  ;;  %v670_v58 = vadd.f32 %v638_v45, %v474_v1  ;;  %v818_v22 = vmul.f32 %v2967_v3, %v2811_v25  ;;  %v4058_v7 = vld [vmem:[#allocation61_spill] sm:$0xff] }
 0x218   :  { %v3451_v39 = vpop.permute.xlu1 %1538  ;;  %v671_v32 = vadd.f32 %v639_v56, %v475_v43  ;;  %v815_v30 = vmul.f32 %v2967_v3, %v2815_v44  ;;  %v845_v61 = vadd.f32 %v813_v59, %v649_v11  ;;  %v820_v33 = vmul.f32 %v2967_v3, %v4054_v41  ;;  %v4056_v43 = vld [vmem:[#allocation58_spill] sm:$0xff] }
 0x219   :  { %1390 = vperm.xlu1 %2105, %v3207_v53   ;;  %v672_v62 = vadd.f32 %v640_v50, %v476_v26  ;;  %v817_v17 = vmul.f32 %v2967_v3, %v4055_v8  ;;  %v848_v1 = vadd.f32 %v816_v52, %v652_v19  ;;  %v819_v25 = vmul.f32 %v2967_v3, %v4056_v43  ;;  %v4059_v11 = vld [vmem:[#allocation62_spill] sm:$0xff]  ;;  %v4063_v8 = vld [vmem:[#allocation68_spill] sm:$0xff] }
 0x21a   :  { %v830_v44 = vmul.f32 %v2967_v3, %v4057_v29  ;;  %v846_v10 = vadd.f32 %v814_v57, %v650_v54  ;;  %v829_v4 = vmul.f32 %v2967_v3, %v4059_v11  ;;  %v834_v56 = vmul.f32 %v2967_v3, %v4060_v24  ;;  %v4062_v54 = vld [vmem:[#allocation66_spill] sm:$0xff] }
 0x21b   :  { %v1319_v0 = vpop.permute.xlu0 %1318  ;;  %v850_v45 = vadd.f32 %v818_v22, %v654_v46  ;;  %v847_v19 = vadd.f32 %v815_v30, %v651_v23  ;;  %v852_v59 = vadd.f32 %v820_v33, %v656_v60  ;;  %v849_v52 = vadd.f32 %v817_v17, %v653_v36  ;;  %v4064_v30 = vld [vmem:[#allocation69_spill] sm:$0xff]  ;;  %v4065_v33 = vld [vmem:[#allocation70_spill] sm:$0xff] }
 0x21c   :  { %v1413_v53 = vmul.f32 %v3397_v6, %v1319_v0  ;;  %v835_v57 = vmul.f32 %v2967_v3, %v4062_v54  ;;  %v1595_v0 = vsub.s32 7, %v2422_v42  ;;  %v862_v41 = vadd.f32 %v830_v44, %v666_v21  ;;  %v4072_v54 = vld [vmem:[#allocation80_spill] sm:$0xff] }
 0x21d   :  { %2107 = vset.pattern.permute.xlu1 %v3966_v14  ;;  %v3472_v55 = vpop.permute.xlu1 %1162  ;;  %v832_v14 = vmul.f32 %v2967_v3, %v4058_v7  ;;  %v1010_v43 = vmul.f32 %v2988_v12, %v4063_v8  ;;  %v861_v36 = vadd.f32 %v829_v4, %v665_v20  ;;  %v3506_v60 = vadd.f32 %v834_v56, %v670_v58 }
 0x21e   :  { %v3479_v26 = vadd.f32 %v1413_v53, %v3202_v37  ;;  %1514 = vperm.xlu1 %2107, %v2144_v15   ;;  %v4061_v37 = vld [vmem:[#allocation64_spill] sm:$0xff]  ;;  %v851_v53 = vadd.f32 %v819_v25, %v655_v18  ;;  %v1013_v42 = vmul.f32 %v2988_v12, %v4064_v30  ;;  %v1009_v17 = vmul.f32 %v2988_v12, %v4065_v33  ;;  %v4068_v15 = vld [vmem:[#allocation74_spill] sm:$0xff] }
 0x21f   :  { %v1387_v48 = vpop.permute.xlu0 %1386  ;;  %v836_v49 = vmul.f32 %v2967_v3, %v4061_v37  ;;  %v3504_v22 = vadd.f32 %v832_v14, %v668_v2  ;;  %v3517_v29 = vadd.f32 %v835_v57, %v671_v32  ;;  %v4067_v2 = vld [vmem:[#allocation72_spill] sm:$0xff]  ;;  %v1206_v58 = vmul.f32 %v3108_v31, %v3095_v34  ;;  %v4069_v14 = vld [vmem:[#allocation77_spill] sm:$0xff]  ;;  %v2145_v32 = vld [vmem:[%s3867_s0 + $0xe8] sm:$0xff] }
 0x220   :  { %v1430_v50 = vmul.f32 %v3397_v6, %v1387_v48  ;;  %v1011_v20 = vmul.f32 %v2988_v12, %v4067_v2  ;;  %v3524_v44 = vrot.slane %v3394_v5, %v1595_v0  ;;  %v1012_v7 = vmul.f32 %v2988_v12, %v4068_v15  ;;  %v4070_v5 = vld [vmem:[#allocation75_spill] sm:$0xff]  ;;  %v4073_v0 = vld [vmem:[#allocation49_spill] sm:$0xff]  ;;  %v4074_v30 = vld [vmem:[#allocation106_spill] sm:$0xff] }
 0x221   :  { %v3510_v21 = vadd.f32 %v836_v49, %v672_v62  ;;  %v1042_v62 = vadd.f32 %v1010_v43, %v846_v10  ;;  %v1025_v11 = vmul.f32 %v2988_v12, %v4069_v14  ;;  %v3538_v34 = vadd.f32 %v1013_v42, %v849_v52  ;;  %v4071_v48 = vld [vmem:[#allocation107_spill] sm:$0xff] }
 0x222   :  { %v3499_v46 = vadd.f32 %v1430_v50, %v3269_v27  ;;  %1578 = vperm.xlu1 %2107, %v3295_v47   ;;  %v3502_v23 = vpop.permute.xlu1 %1286  ;;  %v4066_v27 = vld [vmem:[#allocation71_spill] sm:$0xff]  ;;  %v1014_v10 = vmul.f32 %v2988_v12, %v4070_v5  ;;  %v1205_v56 = vmul.f32 %v3108_v31, %v3066_v51  ;;  %v1402_v37 = vmul.f32 %v3397_v6, %v4071_v48  ;;  %v4075_v51 = vld [vmem:[#allocation8_spill] sm:$0xff] }
 0x223   :  { %v1331_v18 = vpop.permute.xlu0 %1330  ;;  %v1015_v25 = vmul.f32 %v2988_v12, %v4066_v27  ;;  %v1041_v49 = vadd.f32 %v1009_v17, %v845_v61  ;;  %v1026_v57 = vmul.f32 %v2988_v12, %v4072_v54  ;;  %v1221_v52 = vmul.f32 %v3108_v31, %v4073_v0  ;;  %v4076_v27 = vld [vmem:[#allocation76_spill] sm:$0xff]  ;;  %v4077_v17 = vld [vmem:[#allocation98_spill] sm:$0xff] }
 0x224   :  { %v1416_v47 = vmul.f32 %v3397_v6, %v1331_v18  ;;  %v1043_v8 = vadd.f32 %v1011_v20, %v847_v19  ;;  %v1238_v43 = vadd.f32 %v1206_v58, %v1042_v62  ;;  %v1401_v42 = vmul.f32 %v3397_v6, %v4074_v30  ;;  %v4079_v62 = vld [vmem:[#allocation108_spill] sm:$0xff]  ;;  %v4085_v30 = vld [vmem:[#allocation81_spill] sm:$0xff] }
 0x225   :  { %v3548_v50 = vadd.f32 %v1015_v25, %v851_v53  ;;  %v1598_v18 = vmul.f32 %v3524_v44, %v4075_v51  ;;  %v1044_v33 = vadd.f32 %v1012_v7, %v848_v1  ;;  %v1016_v61 = vmul.f32 %v2988_v12, %v4076_v27  ;;  %v4080_v1 = vld [vmem:[#allocation92_spill] sm:$0xff] }
 0x226   :  { %v3531_v4 = vadd.f32 %v1416_v47, %v3149_v28  ;;  %1582 = vperm.xlu1 %2107, %v2145_v32   ;;  %v3536_v24 = vpop.permute.xlu1 %1290  ;;  %v1057_v53 = vadd.f32 %v1025_v11, %v861_v36  ;;  %v1222_v25 = vmul.f32 %v3108_v31, %v4077_v17  ;;  %v4078_v47 = vld [vmem:[#allocation79_spill] sm:$0xff]  ;;  %v3565_v19 = vadd.f32 %v1014_v10, %v850_v45  ;;  %v4081_v36 = vld [vmem:[#allocation2_spill] sm:$0xff] }
 0x227   :  { %v3546_v28 = vpop.permute.xlu0 %1394  ;;  %v1237_v20 = vadd.f32 %v1205_v56, %v1041_v49  ;;  %v1434_v58 = vadd.f32 %v1402_v37, %v1238_v43  ;;  %v1417_v15 = vmul.f32 %v3397_v6, %v4079_v62  ;;  %v1058_v14 = vadd.f32 %v1026_v57, %v862_v41  ;;  %v4082_v37 = vld [vmem:[#allocation78_spill] sm:$0xff]  ;;  %v4083_v57 = vld [vmem:[#allocation109_spill] sm:$0xff] }
 0x228   :  { %v1207_v7 = vmul.f32 %v3108_v31, %v4080_v1  ;;  %v1253_v32 = vadd.f32 %v1221_v52, %v1057_v53  ;;  %v1418_v11 = vmul.f32 %v3397_v6, %v4081_v36  ;;  %v1613_v54 = vmul.f32 %v3524_v44, %v3407_v35  ;;  %v4084_v52 = vld [vmem:[#allocation6_spill] sm:$0xff]  ;;  %v4086_v35 = vld [vmem:[#allocation88_spill] sm:$0xff]  ;;  %v4087_v53 = vld [vmem:[#allocation3_spill] sm:$0xff] }
 0x229   :  { %v1433_v48 = vadd.f32 %v1401_v42, %v1237_v20  ;;  %v1630_v10 = vadd.f32 %v1598_v18, %v1434_v58  ;;  %v3576_v56 = vadd.f32 %v1016_v61, %v852_v59  ;;  %v1031_v41 = vmul.f32 %v2988_v12, %v4082_v37  ;;  %v4088_v1 = vld [vmem:[#allocation83_spill] sm:$0xff] }
 0x22a   :  { %1526 = vperm.xlu1 %2107, %v4078_v47   ;;  %v3563_v2 = vpop.permute.xlu1 %1354  ;;  %v1254_v49 = vadd.f32 %v1222_v25, %v1058_v14  ;;  %v1403_v0 = vmul.f32 %v3397_v6, %v4083_v57  ;;  %v1028_v42 = vmul.f32 %v2988_v12, %v4085_v30  ;;  %v1208_v51 = vmul.f32 %v3108_v31, %v4086_v35 }
 0x22b   :  { %v1449_v18 = vadd.f32 %v1417_v15, %v1253_v32  ;;  %v1239_v27 = vadd.f32 %v1207_v7, %v1043_v8  ;;  %v1404_v17 = vmul.f32 %v3397_v6, %v4087_v53  ;;  %v1599_v25 = vmul.f32 %v3524_v44, %v3425_v63  ;;  %v4090_v7 = vld [vmem:[#allocation110_spill] sm:$0xff]  ;;  %v4094_v53 = vld [vmem:[#allocation89_spill] sm:$0xff] }
 0x22c   :  { %v1467_v5 = vpop.permute.xlu0 %1466  ;;  %v1450_v61 = vadd.f32 %v1418_v11, %v1254_v49  ;;  %v1662_v62 = vmax.f32 %v1630_v10, 0.0  ;;  %v1030_v36 = vmul.f32 %v2988_v12, %v4088_v1  ;;  %v1419_v32 = vmul.f32 %v3397_v6, %v4090_v7  ;;  %v4091_v49 = vld [vmem:[#allocation94_spill] sm:$0xff]  ;;  %v4092_v10 = vld [vmem:[#allocation5_spill] sm:$0xff] }
 0x22d   :  { %v1597_v45 = vmul.f32 %v3524_v44, %v1467_v5  ;;  %v1645_v14 = vadd.f32 %v1613_v54, %v1449_v18  ;;  %v4089_v5 = vld [vmem:[#allocation99_spill] sm:$0xff]  ;;  %v1435_v8 = vadd.f32 %v1403_v0, %v1239_v27  ;;  %v1060_v63 = vadd.f32 %v1028_v42, %v3504_v22 }
 0x22e   :  { %1590 = vperm.xlu1 %2107, %v4084_v52   ;;  %v3583_v43 = vpop.permute.xlu1 %1294  ;;  %v1224_v15 = vmul.f32 %v3108_v31, %v4089_v5  ;;  %v1209_v54 = vmul.f32 %v3108_v31, %v4091_v49  ;;  %v1420_v57 = vmul.f32 %v3397_v6, %v4092_v10  ;;  %v1615_v0 = vmul.f32 %v3524_v44, %v3451_v39  ;;  %v4093_v27 = vld [vmem:[#allocation103_spill] sm:$0xff]  ;;  %v4099_v10 = vld [vmem:[#allocation96_spill] sm:$0xff] }
 0x22f   :  { %v1629_v59 = vadd.f32 %v1597_v45, %v1433_v48  ;;  %v1240_v48 = vadd.f32 %v1208_v51, %v1044_v33  ;;  %v1631_v52 = vadd.f32 %v1599_v25, %v1435_v8  ;;  %v3611_v33 = vadd.f32 %v1031_v41, %v3517_v29  ;;  %v4096_v8 = vld [vmem:[#allocation91_spill] sm:$0xff] }
 0x230   :  { %v1535_v47 = vpop.permute.xlu0 %1534  ;;  %v1062_v42 = vadd.f32 %v1030_v36, %v3506_v60  ;;  %v1256_v51 = vadd.f32 %v1224_v15, %v1060_v63  ;;  %v1210_v25 = vmul.f32 %v3108_v31, %v4094_v53  ;;  %v1405_v39 = vmul.f32 %v3397_v6, %v3502_v23  ;;  %v4095_v15 = vld [vmem:[#allocation85_spill] sm:$0xff]  ;;  %v4098_v63 = vld [vmem:[#allocation4_spill] sm:$0xff] }
 0x231   :  { %v1614_v20 = vmul.f32 %v3524_v44, %v1535_v47  ;;  %v1661_v58 = vmax.f32 %v1629_v59, 0.0  ;;  %v1436_v35 = vadd.f32 %v1404_v17, %v1240_v48  ;;  %v1677_v59 = vmax.f32 %v1645_v14, 0.0 }
 0x232   :  { %v3600_v11 = vpop.permute.xlu1 %1358  ;;  %v1663_v14 = vmax.f32 %v1631_v52, 0.0  ;;  %v1406_v60 = vmul.f32 %v3397_v6, %v3536_v24  ;;  %v1032_v23 = vmul.f32 %v2988_v12, %v4095_v15  ;;  %v1212_v7 = vmul.f32 %v3108_v31, %v4096_v8 }
 0x233   :  { %v1693_v45 = vpack.c.bf16 %v1662_v62, %v1661_v58  ;;  %v1646_v37 = vadd.f32 %v1614_v20, %v1450_v61  ;;  %v1451_v61 = vadd.f32 %v1419_v32, %v4093_v27  ;;  %v1241_v58 = vadd.f32 %v1209_v54, %v3538_v34  ;;  %v4097_v34 = vld [vmem:[#allocation100_spill] sm:$0xff] }
 0x234   :  { %v1479_v30 = vpop.permute.xlu0 %1478  ;;  %v1452_v62 = vadd.f32 %v1420_v57, %v1256_v51  ;;  %v1226_v32 = vmul.f32 %v3108_v31, %v4097_v34  ;;  %v1421_v48 = vmul.f32 %v3397_v6, %v4098_v63  ;;  %v1242_v24 = vadd.f32 %v1210_v25, %v3565_v19 }
 0x235   :  { %v1600_v18 = vmul.f32 %v3524_v44, %v1479_v30  ;;  %2027 = vmatprep.mubr.bf16.mxu0 %v1693_v45  ;;  %v1678_v22 = vmax.f32 %v1646_v37, 0.0  ;;  %v1647_v29 = vadd.f32 %v1615_v0, %v1451_v61  ;;  %v1437_v45 = vadd.f32 %v1405_v39, %v1241_v58  ;;  %v4100_v61 = vld [vmem:[#allocation105_spill] sm:$0xff]  ;;  %v4101_v39 = vld [vmem:[#allocation10_spill] sm:$0xff] }
 0x236   :  { %v1211_v57 = vmul.f32 %v3108_v31, %v4099_v10  ;;  %v1422_v0 = vmul.f32 %v3397_v6, %v3563_v2  ;;  %v1244_v19 = vadd.f32 %v1212_v7, %v3576_v56  ;;  %v1258_v27 = vadd.f32 %v1226_v32, %v1062_v42  ;;  %v4103_v7 = vld [vmem:[#allocation7_spill] sm:$0xff] }
 0x237   :  { %v1632_v17 = vadd.f32 %v1600_v18, %v1436_v35  ;;  %v1483_v47 = vpop.permute.xlu1 %1482  ;;  %v1701_v20 = vpack.c.bf16 %v1678_v22, %v1677_v59  ;;  %v1679_v52 = vmax.f32 %v1647_v29, 0.0  ;;  %v1438_v18 = vadd.f32 %v1406_v60, %v1242_v24 }
 0x238   :  { %v1543_v41 = vpop.permute.xlu0 %1542  ;;  %v1601_v36 = vmul.f32 %v3524_v44, %v1483_v47  ;;  %v1453_v53 = vadd.f32 %v1421_v48, %v4100_v61  ;;  %v1407_v25 = vmul.f32 %v3397_v6, %v3583_v43  ;;  %v1408_v2 = vmul.f32 %v3397_v6, %v4101_v39 }
 0x239   :  { %v1664_v1 = vmax.f32 %v1632_v17, 0.0  ;;  %v1616_v5 = vmul.f32 %v3524_v44, %v1543_v41  ;;  %2043 = vmatprep.mubr.bf16.mxu1 %v1701_v20  ;;  %v1227_v17 = vmul.f32 %v3108_v31, %v3472_v55  ;;  %v4102_v41 = vld [vmem:[#allocation47_spill] sm:$0xff]  ;;  %v1064_v55 = vadd.f32 %v1032_v23, %v3510_v21 }
 0x23a   :  { %v1633_v59 = vadd.f32 %v1601_v36, %v1437_v45  ;;  %v1228_v60 = vmul.f32 %v3108_v31, %v4102_v41  ;;  %v1423_v15 = vmul.f32 %v3397_v6, %v3600_v11  ;;  %v1440_v8 = vadd.f32 %v1408_v2, %v1244_v19  ;;  %v4104_v2 = vld [vmem:[#allocation82_spill] sm:$0xff]  ;;  %v4108_v41 = vld [vmem:[#allocation101_spill] sm:$0xff] }
 0x23b   :  { %v1648_v37 = vadd.f32 %v1616_v5, %v1452_v62  ;;  %v1547_v49 = vpop.permute.xlu1 %1546  ;;  %v1694_v54 = vpack.c.bf16 %v1664_v1, %v1663_v14  ;;  %v1243_v62 = vadd.f32 %v1211_v57, %v3548_v50  ;;  %v1454_v14 = vadd.f32 %v1422_v0, %v1258_v27 }
 0x23c   :  { %v1617_v30 = vmul.f32 %v3524_v44, %v1547_v49  ;;  %v1487_v35 = vpop.permute.xlu0 %1486  ;;  %v1665_v43 = vmax.f32 %v1633_v59, 0.0  ;;  %v1424_v34 = vmul.f32 %v3397_v6, %v4103_v7  ;;  %v1259_v32 = vadd.f32 %v1227_v17, %v3611_v33 }
 0x23d   :  { %v1680_v22 = vmax.f32 %v1648_v37, 0.0  ;;  %v1602_v51 = vmul.f32 %v3524_v44, %v1487_v35  ;;  %2028 = vmatmul.mubr.bf16.vlgmr.msra.gmra.mxu0 %v1694_v54  ;;  %v1439_v5 = vadd.f32 %v1407_v25, %v1243_v62  ;;  %v1260_v21 = vadd.f32 %v1228_v60, %v1064_v55  ;;  %v4106_v62 = vld [vmem:[#allocation12_spill] sm:$0xff]  ;;  %v4110_v55 = vld [vmem:[#allocation59_spill] sm:$0xff] }
 0x23e   :  { %v1649_v29 = vadd.f32 %v1617_v30, %v1453_v53  ;;  %v1455_v11 = vadd.f32 %v1423_v15, %v1259_v32  ;;  %v1427_v39 = vmul.f32 %v3397_v6, %v3447_v13  ;;  %v821_v13 = vmul.f32 %v2967_v3, %v4110_v55  ;;  %v4112_v32 = vld [vmem:[#allocation65_spill] sm:$0xff] }
 0x23f   :  { %v1634_v47 = vadd.f32 %v1602_v51, %v1438_v18  ;;  %v1551_v20 = vpop.permute.xlu1 %1550  ;;  %v1702_v58 = vpack.c.bf16 %v1680_v22, %v1679_v52  ;;  %v1456_v52 = vadd.f32 %v1424_v34, %v1260_v21  ;;  %v4115_v21 = vld [vmem:[#allocation54_spill] sm:$0xff] }
 0x240   :  { %v1618_v56 = vmul.f32 %v3524_v44, %v1551_v20  ;;  %v1491_v42 = vpop.permute.xlu0 %1490  ;;  %v1681_v24 = vmax.f32 %v1649_v29, 0.0  ;;  %v4107_v29 = vld [vmem:[#allocation27_spill] sm:$0xff] }
 0x241   :  { %v1666_v1 = vmax.f32 %v1634_v47, 0.0  ;;  %v1603_v36 = vmul.f32 %v3524_v44, %v1491_v42  ;;  %2044 = vmatmul.mubr.bf16.vlgmr.msra.gmra.mxu1 %v1702_v58  ;;  %v4105_v58 = vld [vmem:[#allocation11_spill] sm:$0xff] }
 0x242   :  { %v1650_v50 = vadd.f32 %v1618_v56, %v1454_v14  ;;  %v226_v14 = vmul.f32 %v4106_v62, %v4105_v58  ;;  %v429_v56 = vmul.f32 %v2576_v40, %v4107_v29  ;;  %v838_v40 = vmul.f32 %v2967_v3, %v4112_v32 }
 0x243   :  { %v1495_v63 = vpop.permute.xlu1 %1494  ;;  %v1695_v48 = vpack.c.bf16 %v1666_v1, %v1665_v43  ;;  %v1635_v37 = vadd.f32 %v1603_v36, %v1439_v5  ;;  %v4109_v43 = vld [vmem:[#allocation43_spill] sm:$0xff] }
 0x244   :  { %v1682_v45 = vmax.f32 %v1650_v50, 0.0  ;;  %v1604_v49 = vmul.f32 %v3524_v44, %v1495_v63  ;;  %v1555_v54 = vpop.permute.xlu0 %1554  ;;  %v265_v60 = vadd.f32 %v4108_v41, %v226_v14  ;;  %v625_v1 = vmul.f32 %v2698_v38, %v4109_v43  ;;  %v4111_v50 = vld [vmem:[#allocation73_spill] sm:$0xff]  ;;  %v4114_v38 = vld [vmem:[#allocation87_spill] sm:$0xff] }
 0x245   :  { %v1619_v23 = vmul.f32 %v3524_v44, %v1555_v54  ;;  %2031 = vmatprep.mubr.bf16.mxu0 %v1695_v48  ;;  %v1667_v30 = vmax.f32 %v1635_v37, 0.0  ;;  %v4113_v63 = vld [vmem:[#allocation97_spill] sm:$0xff]  ;;  %v1034_v37 = vmul.f32 %v2988_v12, %v4114_v38 }
 0x246   :  { %v1636_v10 = vadd.f32 %v1604_v49, %v1440_v8  ;;  %v1703_v57 = vpack.c.bf16 %v1682_v45, %v1681_v24  ;;  %v461_v36 = vadd.f32 %v429_v56, %v265_v60  ;;  %v1017_v8 = vmul.f32 %v2988_v12, %v4111_v50  ;;  %v4117_v14 = vld [vmem:[#allocation93_spill] sm:$0xff] }
 0x247   :  { %v1559_v0 = vpop.permute.xlu1 %1558  ;;  %v1651_v33 = vadd.f32 %v1619_v23, %v1455_v11  ;;  %v1213_v48 = vmul.f32 %v3108_v31, %v4113_v63  ;;  %v870_v23 = vadd.f32 %v838_v40, %v4115_v21 }
 0x248   :  { %v1668_v35 = vmax.f32 %v1636_v10, 0.0  ;;  %v1620_v18 = vmul.f32 %v3524_v44, %v1559_v0  ;;  %2047 = vmatprep.mubr.bf16.mxu1 %v1703_v57  ;;  %v657_v15 = vadd.f32 %v625_v1, %v461_v36  ;;  %v1499_v7 = vpop.permute.xlu0 %1498 }
 0x249   :  { %v1683_v51 = vmax.f32 %v1651_v33, 0.0 }
 0x24a   :  { %v1652_v59 = vadd.f32 %v1620_v18, %v1456_v52  ;;  %v1696_v22 = vpack.c.bf16 %v1668_v35, %v1667_v30  ;;  %v853_v34 = vadd.f32 %v821_v13, %v657_v15  ;;  %v1066_v52 = vadd.f32 %v1034_v37, %v870_v23  ;;  %v4119_v23 = vld [vmem:[#allocation67_spill] sm:$0xff] }
 0x24b   :  { %v1605_v30 = vmul.f32 %v3524_v44, %v1499_v7 }
 0x24c   :  { %v1684_v19 = vmax.f32 %v1652_v59, 0.0  ;;  %v1175_v27 = vpop.permute.xlu1 %1174  ;;  %2032 = vmatmul.mubr.bf16.gmra.mxu0 %v1696_v22  ;;  %v1049_v45 = vadd.f32 %v1017_v8, %v853_v34  ;;  %v1567_v54 = vpop.permute.xlu0 %1566 }
 0x24d   :  { %v1230_v10 = vmul.f32 %v3108_v31, %v1175_v27 }
 0x24e   :  { %v1704_v61 = vpack.c.bf16 %v1684_v19, %v1683_v51  ;;  %v1245_v11 = vadd.f32 %v1213_v48, %v1049_v45  ;;  %v1622_v19 = vmul.f32 %v3524_v44, %v1567_v54 }
 0x24f   :  { %v1262_v33 = vadd.f32 %v1230_v10, %v1066_v52  ;;  %v4120_v10 = vld [vmem:[#allocation90_spill] sm:$0xff]  ;;  %v4121_v52 = vld [vmem:[#allocation55_spill] sm:$0xff] }
 0x250   :  { %v1179_v53 = vpop.permute.xlu1 %1178  ;;  %2048 = vmatmul.mubr.bf16.gmra.mxu1 %v1704_v61  ;;  %v1511_v18 = vpop.permute.xlu0 %1510 }
 0x251   :  { %v1231_v25 = vmul.f32 %v3108_v31, %v1179_v53  ;;  %v1608_v58 = vmul.f32 %v3524_v44, %v1511_v18 }
 0x253   :  { %v1263_v17 = vadd.f32 %v1231_v25, %v4104_v2  ;;  %v4116_v2 = vld [vmem:[#allocation102_spill] sm:$0xff] }
 0x255   :  { %v1303_v47 = vpop.permute.xlu1 %1302  ;;  %v3665_v20 = vadd.f32 %v1427_v39, %v1263_v17 }
 0x256   :  { %v1409_v49 = vmul.f32 %v3397_v6, %v1303_v47 }
 0x258   :  { %v1441_v0 = vadd.f32 %v1409_v49, %v1245_v11  ;;  %v844_v11 = vmul.f32 %v2967_v3, %v4119_v23 }
 0x259   :  { %v1367_v42 = vpop.permute.xlu1 %1366 }
 0x25a   :  { %v1637_v59 = vadd.f32 %v1605_v30, %v1441_v0  ;;  %v1425_v22 = vmul.f32 %v3397_v6, %v1367_v42  ;;  %v1575_v42 = vpop.permute.xlu0 %1574  ;;  %v876_v0 = vadd.f32 %v844_v11, %v4121_v52 }
 0x25c   :  { %v1669_v39 = vmax.f32 %v1637_v59, 0.0  ;;  %v1457_v17 = vadd.f32 %v1425_v22, %v4116_v2 }
 0x25d   :  { %v1371_v5 = vpop.permute.xlu1 %1370 }
 0x25e   :  { %v1426_v35 = vmul.f32 %v3397_v6, %v1371_v5  ;;  %v4118_v5 = vld [vmem:[#allocation104_spill] sm:$0xff] }
 0x260   :  { %v1458_v51 = vadd.f32 %v1426_v35, %v1262_v33  ;;  %v1432_v33 = vmul.f32 %v3397_v6, %v3546_v28 }
 0x261   :  { %v1315_v24 = vpop.permute.xlu1 %1314 }
 0x262   :  { %v1412_v53 = vmul.f32 %v3397_v6, %v1315_v24  ;;  %v1654_v47 = vadd.f32 %v1622_v19, %v1458_v51 }
 0x264   :  { %v1444_v29 = vadd.f32 %v1412_v53, %v4117_v14  ;;  %v1686_v36 = vmax.f32 %v1654_v47, 0.0  ;;  %v4122_v53 = vld [vmem:[#allocation95_spill] sm:$0xff] }
 0x265   :  { %v1379_v57 = vpop.permute.xlu1 %1378 }
 0x266   :  { %v1428_v56 = vmul.f32 %v3397_v6, %v1379_v57  ;;  %v1640_v13 = vadd.f32 %v1608_v58, %v1444_v29  ;;  %v1040_v57 = vmul.f32 %v2988_v12, %v4120_v10  ;;  %v1519_v12 = vpop.permute.xlu0 %1518  ;;  %v4123_v29 = vld [vmem:[#allocation84_spill] sm:$0xff] }
 0x268   :  { %v1460_v15 = vadd.f32 %v1428_v56, %v4118_v5  ;;  %v1672_v40 = vmax.f32 %v1640_v13, 0.0  ;;  %v1072_v35 = vadd.f32 %v1040_v57, %v876_v0 }
 0x26a   :  { %v1503_v61 = vpop.permute.xlu1 %1502 }
 0x26b   :  { %v1606_v27 = vmul.f32 %v3524_v44, %v1503_v61 }
 0x26d   :  { %v1638_v25 = vadd.f32 %v1606_v27, %v3414_v9  ;;  %v1624_v9 = vmul.f32 %v3524_v44, %v1575_v42 }
 0x26e   :  { %v1563_v62 = vpop.permute.xlu1 %1562 }
 0x26f   :  { %v1670_v41 = vmax.f32 %v1638_v25, 0.0  ;;  %v1621_v60 = vmul.f32 %v3524_v44, %v1563_v62  ;;  %v1656_v63 = vadd.f32 %v1624_v9, %v1460_v15  ;;  %v1610_v25 = vmul.f32 %v3524_v44, %v1519_v12 }
 0x271   :  { %v1653_v43 = vadd.f32 %v1621_v60, %v1457_v17  ;;  %v1697_v1 = vpack.c.bf16 %v1670_v41, %v1669_v39  ;;  %v1688_v37 = vmax.f32 %v1656_v63, 0.0 }
 0x272   :  { %v1507_v55 = vpop.permute.xlu1 %1506 }
 0x273   :  { %v1685_v50 = vmax.f32 %v1653_v43, 0.0  ;;  %v1607_v8 = vmul.f32 %v3524_v44, %v1507_v55  ;;  %2035 = vmatprep.mubr.bf16.mxu0 %v1697_v1  ;;  %v1523_v43 = vpop.permute.xlu0 %1522  ;;  %v4124_v55 = vld [vmem:[#allocation32_spill] sm:$0xff] }
 0x275   :  { %v1639_v7 = vadd.f32 %v1607_v8, %v3439_v16  ;;  %v1705_v34 = vpack.c.bf16 %v1686_v36, %v1685_v50  ;;  %v1611_v8 = vmul.f32 %v3524_v44, %v1523_v43 }
 0x276   :  { %v1571_v32 = vpop.permute.xlu1 %1570 }
 0x277   :  { %v1671_v48 = vmax.f32 %v1639_v7, 0.0  ;;  %v1623_v24 = vmul.f32 %v3524_v44, %v1571_v32  ;;  %2051 = vmatprep.mubr.bf16.mxu1 %v1705_v34  ;;  %v4125_v7 = vld [vmem:[#allocation86_spill] sm:$0xff] }
 0x279   :  { %v1655_v45 = vadd.f32 %v1623_v24, %v3665_v20  ;;  %v1698_v38 = vpack.c.bf16 %v1672_v40, %v1671_v48  ;;  %v1587_v40 = vpop.permute.xlu0 %1586 }
 0x27b   :  { %v1687_v49 = vmax.f32 %v1655_v45, 0.0  ;;  %v1187_v54 = vpop.permute.xlu1 %1186  ;;  %2036 = vmatmul.mubr.bf16.gmra.mxu0 %v1698_v38 }
 0x27c   :  { %v1233_v2 = vmul.f32 %v3108_v31, %v1187_v54 }
 0x27d   :  { %v1706_v21 = vpack.c.bf16 %v1688_v37, %v1687_v49 }
 0x27e   :  { %v1265_v56 = vadd.f32 %v1233_v2, %v4123_v29 }
 0x27f   :  { %v1195_v16 = vpop.permute.xlu1 %1194  ;;  %2052 = vmatmul.mubr.bf16.gmra.mxu1 %v1706_v21 }
 0x280   :  { %v1235_v1 = vmul.f32 %v3108_v31, %v1195_v16 }
 0x282   :  { %v1267_v34 = vadd.f32 %v1235_v1, %v4125_v7 }
 0x283   :  { %v1199_v30 = vpop.permute.xlu1 %1198 }
 0x284   :  { %v1236_v20 = vmul.f32 %v3108_v31, %v1199_v30  ;;  %v3737_v30 = vld [vmem:[%s3871_s4] ss:$0 sm:$0xff] }
 0x286   :  { %v1268_v18 = vadd.f32 %v1236_v20, %v1072_v35 }
 0x288   :  { %v1323_v59 = vpop.permute.xlu1 %1322  ;;  %v1464_v22 = vadd.f32 %v1432_v33, %v1268_v18 }
 0x289   :  { %v1414_v3 = vmul.f32 %v3397_v6, %v1323_v59 }
 0x28b   :  { %v1446_v27 = vadd.f32 %v1414_v3, %v4122_v53 }
 0x28c   :  { %v1383_v51 = vpop.permute.xlu1 %1382 }
 0x28d   :  { %v1642_v17 = vadd.f32 %v1610_v25, %v1446_v27  ;;  %v1429_v28 = vmul.f32 %v3397_v6, %v1383_v51 }
 0x28f   :  { %v1674_v42 = vmax.f32 %v1642_v17, 0.0  ;;  %v1461_v36 = vadd.f32 %v1429_v28, %v1265_v56 }
 0x290   :  { %v1327_v19 = vpop.permute.xlu1 %1326 }
 0x291   :  { %v1415_v62 = vmul.f32 %v3397_v6, %v1327_v19 }
 0x293   :  { %v1447_v13 = vadd.f32 %v1415_v62, %v4124_v55 }
 0x294   :  { %v1391_v61 = vpop.permute.xlu1 %1390 }
 0x295   :  { %v1431_v15 = vmul.f32 %v3397_v6, %v1391_v61  ;;  %v1643_v63 = vadd.f32 %v1611_v8, %v1447_v13  ;;  %v1627_v6 = vmul.f32 %v3524_v44, %v1587_v40 }
 0x297   :  { %v1463_v48 = vadd.f32 %v1431_v15, %v1267_v34  ;;  %v1675_v21 = vmax.f32 %v1643_v63, 0.0 }
 0x299   :  { %v1515_v39 = vpop.permute.xlu1 %1514  ;;  %v1659_v23 = vadd.f32 %v1627_v6, %v1463_v48 }
 0x29a   :  { %v1609_v47 = vmul.f32 %v3524_v44, %v1515_v39 }
 0x29b   :  { %v1691_v57 = vmax.f32 %v1659_v23, 0.0 }
 0x29c   :  { %v1641_v58 = vadd.f32 %v1609_v47, %v3479_v26 }
 0x29d   :  { %v1579_v14 = vpop.permute.xlu1 %1578 }
 0x29e   :  { %v1673_v41 = vmax.f32 %v1641_v58, 0.0  ;;  %v1625_v60 = vmul.f32 %v3524_v44, %v1579_v14 }
 0x2a0   :  { %v1699_v9 = vpack.c.bf16 %v1674_v42, %v1673_v41  ;;  %v1657_v26 = vadd.f32 %v1625_v60, %v1461_v36 }
 0x2a1   :  { %v1583_v5 = vpop.permute.xlu1 %1582 }
 0x2a2   :  { %v1626_v50 = vmul.f32 %v3524_v44, %v1583_v5  ;;  %2039 = vmatprep.mubr.bf16.mxu0 %v1699_v9  ;;  %v1689_v24 = vmax.f32 %v1657_v26, 0.0 }
 0x2a4   :  { %v1658_v32 = vadd.f32 %v1626_v50, %v3499_v46 }
 0x2a5   :  { %v1527_v31 = vpop.permute.xlu1 %1526 }
 0x2a6   :  { %v1690_v45 = vmax.f32 %v1658_v32, 0.0  ;;  %v1612_v38 = vmul.f32 %v3524_v44, %v1527_v31 }
 0x2a8   :  { %v1644_v37 = vadd.f32 %v1612_v38, %v3531_v4  ;;  %v1707_v49 = vpack.c.bf16 %v1690_v45, %v1689_v24 }
 0x2a9   :  { %v1591_v54 = vpop.permute.xlu1 %1590 }
 0x2aa   :  { %v1676_v11 = vmax.f32 %v1644_v37, 0.0  ;;  %v1628_v16 = vmul.f32 %v3524_v44, %v1591_v54  ;;  %2055 = vmatprep.mubr.bf16.mxu1 %v1707_v49 }
 0x2ac   :  { %v1660_v46 = vadd.f32 %v1628_v16, %v1464_v22  ;;  %v1700_v10 = vpack.c.bf16 %v1676_v11, %v1675_v21 }
 0x2ae   :  { %v1692_v52 = vmax.f32 %v1660_v46, 0.0  ;;  %2040 = vmatmul.mubr.bf16.gmra.mxu0 %v1700_v10 }
 0x2b0   :  { %v1708_v0 = vpack.c.bf16 %v1692_v52, %v1691_v57 }
 0x2b2   :  { %2056 = vmatmul.mubr.bf16.gmra.mxu1 %v1708_v0 }
 0x2fd   :  { %v2029_v4 = vpop.f32.mrf.mxu0 }
 0x2fe   :  { %v1823_v35 = vadd.f32 %v2029_v4, %v3737_v30 }
 0x2ff   :  { %v1814_v20 = vpop.f32.mrf.mxu0 }
 0x300   :  { %1943 = vst [vmem:[%s3872_s5 + $0x10] sm:$0xff] %v1823_v35  ;;  %v1815_v44 = vadd.f32 %v3737_v30, %v1814_v20 }
 0x301   :  { %v2030_v33 = vpop.f32.mrf.mxu0  ;;  %v2045_v18 = vpop.f32.mrf.mxu1 }
 0x302   :  { %1941 = vst [vmem:[%s3872_s5] sm:$0xff] %v1815_v44  ;;  %v1826_v59 = vadd.f32 %v2030_v33, %v3737_v30  ;;  %v1887_v22 = vadd.f32 %v2045_v18, %v3737_v30 }
 0x303   :  { %v1817_v51 = vpop.f32.mrf.mxu0  ;;  %v1878_v19 = vpop.f32.mrf.mxu1 }
 0x304   :  { %1944 = vst [vmem:[%s3872_s5 + $0x18] sm:$0xff] %v1826_v59  ;;  %1959 = vst [vmem:[%s3872_s5 + $0x90] sm:$0xff] %v1887_v22  ;;  %v1818_v3 = vadd.f32 %v3737_v30, %v1817_v51  ;;  %v1879_v61 = vadd.f32 %v3737_v30, %v1878_v19 }
 0x305   :  { %v2046_v53 = vpop.f32.mrf.mxu1 }
 0x306   :  { %1942 = vst [vmem:[%s3872_s5 + $0x8] sm:$0xff] %v1818_v3  ;;  %1957 = vst [vmem:[%s3872_s5 + $0x80] sm:$0xff] %v1879_v61  ;;  %v1890_v27 = vadd.f32 %v2046_v53, %v3737_v30 }
 0x307   :  { %v1881_v12 = vpop.f32.mrf.mxu1 }
 0x308   :  { %1960 = vst [vmem:[%s3872_s5 + $0x98] sm:$0xff] %v1890_v27  ;;  %v1882_v25 = vadd.f32 %v3737_v30, %v1881_v12 }
 0x30a   :  { %1958 = vst [vmem:[%s3872_s5 + $0x88] sm:$0xff] %v1882_v25 }
 0x30c   :  { %v2033_v39 = vpop.f32.mrf.mxu0 }
 0x30d   :  { %v1839_v2 = vadd.f32 %v2033_v39, %v3737_v30 }
 0x30e   :  { %v1830_v17 = vpop.f32.mrf.mxu0 }
 0x30f   :  { %1947 = vst [vmem:[%s3872_s5 + $0x30] sm:$0xff] %v1839_v2  ;;  %v1831_v47 = vadd.f32 %v3737_v30, %v1830_v17 }
 0x310   :  { %v2034_v28 = vpop.f32.mrf.mxu0  ;;  %v2049_v58 = vpop.f32.mrf.mxu1 }
 0x311   :  { %1945 = vst [vmem:[%s3872_s5 + $0x20] sm:$0xff] %v1831_v47  ;;  %v1842_v62 = vadd.f32 %v2034_v28, %v3737_v30  ;;  %v1903_v14 = vadd.f32 %v2049_v58, %v3737_v30 }
 0x312   :  { %v1833_v29 = vpop.f32.mrf.mxu0  ;;  %v1894_v56 = vpop.f32.mrf.mxu1 }
 0x313   :  { %1948 = vst [vmem:[%s3872_s5 + $0x38] sm:$0xff] %v1842_v62  ;;  %1963 = vst [vmem:[%s3872_s5 + $0xb0] sm:$0xff] %v1903_v14  ;;  %v1834_v42 = vadd.f32 %v3737_v30, %v1833_v29  ;;  %v1895_v41 = vadd.f32 %v3737_v30, %v1894_v56 }
 0x314   :  { %v2050_v60 = vpop.f32.mrf.mxu1 }
 0x315   :  { %1946 = vst [vmem:[%s3872_s5 + $0x28] sm:$0xff] %v1834_v42  ;;  %1961 = vst [vmem:[%s3872_s5 + $0xa0] sm:$0xff] %v1895_v41  ;;  %v1906_v43 = vadd.f32 %v2050_v60, %v3737_v30 }
 0x316   :  { %v1897_v1 = vpop.f32.mrf.mxu1 }
 0x317   :  { %1964 = vst [vmem:[%s3872_s5 + $0xb8] sm:$0xff] %v1906_v43  ;;  %v1898_v36 = vadd.f32 %v3737_v30, %v1897_v1 }
 0x319   :  { %1962 = vst [vmem:[%s3872_s5 + $0xa8] sm:$0xff] %v1898_v36 }
 0x33b   :  { %v2037_v9 = vpop.f32.mrf.mxu0 }
 0x33c   :  { %v1855_v55 = vadd.f32 %v2037_v9, %v3737_v30 }
 0x33d   :  { %v1846_v13 = vpop.f32.mrf.mxu0 }
 0x33e   :  { %1951 = vst [vmem:[%s3872_s5 + $0x50] sm:$0xff] %v1855_v55  ;;  %v1847_v5 = vadd.f32 %v3737_v30, %v1846_v13 }
 0x33f   :  { %v2038_v15 = vpop.f32.mrf.mxu0  ;;  %v2053_v26 = vpop.f32.mrf.mxu1 }
 0x340   :  { %1949 = vst [vmem:[%s3872_s5 + $0x40] sm:$0xff] %v1847_v5  ;;  %v1858_v50 = vadd.f32 %v2038_v15, %v3737_v30  ;;  %v1919_v8 = vadd.f32 %v2053_v26, %v3737_v30 }
 0x341   :  { %v1849_v7 = vpop.f32.mrf.mxu0  ;;  %v1910_v34 = vpop.f32.mrf.mxu1 }
 0x342   :  { %1952 = vst [vmem:[%s3872_s5 + $0x58] sm:$0xff] %v1858_v50  ;;  %1967 = vst [vmem:[%s3872_s5 + $0xd0] sm:$0xff] %v1919_v8  ;;  %v1850_v32 = vadd.f32 %v3737_v30, %v1849_v7  ;;  %v1911_v40 = vadd.f32 %v3737_v30, %v1910_v34 }
 0x343   :  { %v2054_v63 = vpop.f32.mrf.mxu1 }
 0x344   :  { %1950 = vst [vmem:[%s3872_s5 + $0x48] sm:$0xff] %v1850_v32  ;;  %1965 = vst [vmem:[%s3872_s5 + $0xc0] sm:$0xff] %v1911_v40  ;;  %v1922_v31 = vadd.f32 %v2054_v63, %v3737_v30 }
 0x345   :  { %v1913_v48 = vpop.f32.mrf.mxu1 }
 0x346   :  { %1968 = vst [vmem:[%s3872_s5 + $0xd8] sm:$0xff] %v1922_v31  ;;  %v1914_v24 = vadd.f32 %v3737_v30, %v1913_v48 }
 0x348   :  { %1966 = vst [vmem:[%s3872_s5 + $0xc8] sm:$0xff] %v1914_v24 }
 0x36e   :  { %v2041_v45 = vpop.f32.mrf.mxu0 }
 0x36f   :  { %v1871_v38 = vadd.f32 %v2041_v45, %v3737_v30 }
 0x370   :  { %v1862_v6 = vpop.f32.mrf.mxu0 }
 0x371   :  { %1955 = vst [vmem:[%s3872_s5 + $0x70] sm:$0xff] %v1871_v38  ;;  %v1863_v37 = vadd.f32 %v3737_v30, %v1862_v6 }
 0x372   :  { %v2042_v49 = vpop.f32.mrf.mxu0  ;;  %v2057_v54 = vpop.f32.mrf.mxu1 }
 0x373   :  { %1953 = vst [vmem:[%s3872_s5 + $0x60] sm:$0xff] %v1863_v37  ;;  %v1874_v21 = vadd.f32 %v2042_v49, %v3737_v30  ;;  %v1935_v23 = vadd.f32 %v2057_v54, %v3737_v30 }
 0x374   :  { %v1865_v11 = vpop.f32.mrf.mxu0  ;;  %v1926_v16 = vpop.f32.mrf.mxu1 }
 0x375   :  { %1956 = vst [vmem:[%s3872_s5 + $0x78] sm:$0xff] %v1874_v21  ;;  %1971 = vst [vmem:[%s3872_s5 + $0xf0] sm:$0xff] %v1935_v23  ;;  %v1866_v46 = vadd.f32 %v3737_v30, %v1865_v11  ;;  %v1927_v10 = vadd.f32 %v3737_v30, %v1926_v16 }
 0x376   :  { %v2058_v57 = vpop.f32.mrf.mxu1 }
 0x377   :  { %1954 = vst [vmem:[%s3872_s5 + $0x68] sm:$0xff] %v1866_v46  ;;  %1969 = vst [vmem:[%s3872_s5 + $0xe0] sm:$0xff] %v1927_v10  ;;  %v1938_v52 = vadd.f32 %v2058_v57, %v3737_v30 }
 0x378   :  { %v1929_v0 = vpop.f32.mrf.mxu1 }
 0x379   :  { %1972 = vst [vmem:[%s3872_s5 + $0xf8] sm:$0xff] %v1938_v52  ;;  %v1930_v4 = vadd.f32 %v3737_v30, %v1929_v0 }
 0x37b   :  { %1970 = vst [vmem:[%s3872_s5 + $0xe8] sm:$0xff] %v1930_v4 }

</bundles_post_ra>
